<compile_context>
chip_gen: v6e
topology: v6e:2x2x1
jax: 0.10.0
libtpu: 0.0.40
codegen_flags: <defaults>
</compile_context>

<pallas_src>
import jax
import jax.numpy as jnp
import numpy as np
from jax.experimental import pallas as pl
from jax.experimental.pallas import tpu as pltpu


# ---------------------------------------------------------------------------
# Fused kernel: BiLSTM -> Linear1 -> ELU -> Linear2 -> LogSoftmax -> NLL(mean)
#   x:        [N, D]        f32
#   wih_cat:  [D, 8*HD]     bf16  columns [i_f,i_b,f_f,f_b,g_f,g_b,o_f,o_b]
#   whh_bd:   [2*HD, 8*HD]  bf16  block-diagonal (fwd rows / bwd rows)
#   b_cat:    [1, 8*HD]     f32   (b_ih + b_hh, interleaved like wih_cat)
#   w1_f/w1_b:[HD, HID]     bf16  Linear1 weight split by direction
#   b1:       [1, HID]      f32
#   w2t_pad:  [HID, CPAD]   bf16  Linear2 weight, zero-padded to CPAD columns
#   b2_pad:   [1, CPAD]     f32   real classes = b2, pad classes = -1e9
#   tgt:      [N, 1]        int32
# outputs:   logits_pad [N, CPAD] f32, loss [1, 1] f32
# scratch:   pre [N, 8*HD] f32, hf [N, HD] f32, hb [N, HD] f32
# ---------------------------------------------------------------------------
def _fused_kernel(x_ref, wih_ref, whh_ref, b_ref,
                  w1f_ref, w1b_ref, b1_ref, w2t_ref, b2_ref, tgt_ref,
                  logits_ref, loss_ref,
                  pre_ref, hf_ref, hb_ref):
    n = x_ref.shape[0]
    hd = hf_ref.shape[1]            # per-direction hidden size
    g8 = 8 * hd                     # merged gate width (both directions)

    # ---- hoisted input projection for both directions, bias folded in ----
    pre_ref[...] = (
        jnp.dot(x_ref[...].astype(jnp.bfloat16), wih_ref[...],
                preferred_element_type=jnp.float32)
        + b_ref[...])

    whh = whh_ref[...]              # bf16 block-diagonal recurrent weights

    # lane selector: within each 2*HD gate pair the first HD lanes belong to
    # the forward direction (row i), the last HD to the backward (row n-1-i).
    lane = jax.lax.broadcasted_iota(jnp.int32, (1, g8), 1)
    fwd_mask = (lane % (2 * hd)) < hd

    def step(i, carry):
        h, c = carry                                     # [1, 2*HD] f32
        row_f = pre_ref[pl.ds(i, 1), :]                  # position i
        row_b = pre_ref[pl.ds(n - 1 - i, 1), :]          # position n-1-i
        pre_step = jnp.where(fwd_mask, row_f, row_b)     # [1, 8*HD]
        gates = pre_step + jnp.dot(h.astype(jnp.bfloat16), whh,
                                   preferred_element_type=jnp.float32)
        sig = jax.nn.sigmoid(gates)                      # one full-vector EUP call
        i_g = sig[:, 0 * hd:2 * hd]                      # [i_f | i_b]
        f_g = sig[:, 2 * hd:4 * hd]                      # [f_f | f_b]
        g_g = jnp.tanh(gates[:, 4 * hd:6 * hd])          # [g_f | g_b]
        o_g = sig[:, 6 * hd:8 * hd]                      # [o_f | o_b]
        c_new = f_g * c + i_g * g_g
        h_new = o_g * jnp.tanh(c_new)                    # [1, 2*HD]
        hf_ref[pl.ds(i, 1), :] = h_new[:, :hd]           # lane-offset-0 stores
        hb_ref[pl.ds(n - 1 - i, 1), :] = h_new[:, hd:]
        return (h_new, c_new)

    init = (jnp.zeros((1, 2 * hd), jnp.float32),
            jnp.zeros((1, 2 * hd), jnp.float32))
    jax.lax.fori_loop(0, n, step, init, unroll=True)

    # ---- head: Linear1 -> ELU -> Linear2 -> LogSoftmax -> NLL(mean) ----
    h1 = (jnp.dot(hf_ref[...].astype(jnp.bfloat16), w1f_ref[...],
                  preferred_element_type=jnp.float32)
          + jnp.dot(hb_ref[...].astype(jnp.bfloat16), w1b_ref[...],
                    preferred_element_type=jnp.float32)
          + b1_ref[...])
    # ELU (alpha=1). expm1(x) == tanh(x/2) * (exp(x) + 1): cancellation-free for
    # small |x| and uses only Mosaic-supported transcendentals.
    elu_neg = jnp.tanh(0.5 * h1) * (jnp.exp(h1) + 1.0)
    h1 = jnp.where(h1 > 0, h1, elu_neg)

    logits = (jnp.dot(h1.astype(jnp.bfloat16), w2t_ref[...],
                      preferred_element_type=jnp.float32)
              + b2_ref[...])                             # [N, CPAD]; pads = -1e9
    logits_ref[...] = logits                             # lane-dense store

    m = jnp.max(logits, axis=1, keepdims=True)
    lse = m + jnp.log(jnp.sum(jnp.exp(logits - m), axis=1, keepdims=True))
    logp = logits - lse                                  # log_softmax(dim=1)
    cls = jax.lax.broadcasted_iota(jnp.int32, logits.shape, 1)
    onehot = (cls == tgt_ref[...]).astype(jnp.float32)
    picked = jnp.sum(logp * onehot, axis=1, keepdims=True)      # [N, 1]
    loss_ref[...] = -(jnp.sum(picked, axis=0, keepdims=True) / n)


def sentence_bilstm_forward(x, lstm_params, w1t, b1, w2t, b2, tgt):
    """Returns (loss scalar, logits [N, C]) matching SentenceBiLSTMCRF.forward."""
    wih_f, whh_f, b_f, wih_b, whh_b, b_b = lstm_params
    n, d = x.shape
    hd = whh_f.shape[0]
    assert d == 2 * hd, "init_hidden_size must be 2 * per-direction hidden"
    hid = w1t.shape[1]
    c = w2t.shape[1]
    cpad = ((c + 127) // 128) * 128          # lane-dense padded class dim

    def interleave(wf, wb):
        # [..., 4*hd] per direction (gate order i,f,g,o) ->
        # [..., 8*hd] with blocks [i_f,i_b,f_f,f_b,g_f,g_b,o_f,o_b]
        parts = []
        for k in range(4):
            parts.append(wf[..., k * hd:(k + 1) * hd])
            parts.append(wb[..., k * hd:(k + 1) * hd])
        return jnp.concatenate(parts, axis=-1)

    wih_cat = interleave(wih_f, wih_b).astype(jnp.bfloat16)        # [D, 8*HD]
    zero_hh = jnp.zeros_like(whh_f)
    whh_bd = jnp.concatenate([interleave(whh_f, zero_hh),          # fwd rows
                              interleave(zero_hh, whh_b)],         # bwd rows
                             axis=0).astype(jnp.bfloat16)          # [2*HD, 8*HD]
    b_cat = interleave(b_f, b_b)                                   # [1, 8*HD]

    w1_f = w1t[:hd, :].astype(jnp.bfloat16)                        # [HD, HID]
    w1_b = w1t[hd:, :].astype(jnp.bfloat16)                        # [HD, HID]
    w2t_pad = jnp.zeros((hid, cpad), jnp.float32).at[:, :c].set(w2t)
    w2t_pad = w2t_pad.astype(jnp.bfloat16)
    b2_pad = jnp.full((1, cpad), -1e9, jnp.float32).at[:, :c].set(b2)

    vmem = pl.BlockSpec(memory_space=pltpu.MemorySpace.VMEM)
    logits_pad, loss = pl.pallas_call(
        _fused_kernel,
        out_shape=(jax.ShapeDtypeStruct((n, cpad), jnp.float32),
                   jax.ShapeDtypeStruct((1, 1), jnp.float32)),
        in_specs=[vmem] * 10,
        out_specs=(vmem, vmem),
        scratch_shapes=[pltpu.VMEM((n, 8 * hd), jnp.float32),      # pre-gates
                        pltpu.VMEM((n, hd), jnp.float32),          # fwd hidden
                        pltpu.VMEM((n, hd), jnp.float32)],         # bwd hidden
    )(x, wih_cat, whh_bd, b_cat, w1_f, w1_b, b1, w2t_pad, b2_pad,
      tgt.reshape(n, 1).astype(jnp.int32))
    return loss[0, 0], logits_pad[:, :c]


# ---------------------------------------------------------------------------
# Pure-JAX reference (f32, natural layouts) for verification.
# ---------------------------------------------------------------------------
def ref_forward(x, lstm_params, w1t, b1, w2t, b2, tgt):
    wih_f, whh_f, b_f, wih_b, whh_b, b_b = lstm_params

    def run_dir(wih, whh, b, reverse):
        hd = whh.shape[0]
        xs = x[::-1] if reverse else x

        def step(carry, x_t):
            h, c = carry
            gates = x_t[None, :] @ wih + h @ whh + b
            ig = jax.nn.sigmoid(gates[:, :hd])
            fg = jax.nn.sigmoid(gates[:, hd:2 * hd])
            gg = jnp.tanh(gates[:, 2 * hd:3 * hd])
            og = jax.nn.sigmoid(gates[:, 3 * hd:])
            c_new = fg * c + ig * gg
            h_new = og * jnp.tanh(c_new)
            return (h_new, c_new), h_new[0]

        init = (jnp.zeros((1, hd), jnp.float32), jnp.zeros((1, hd), jnp.float32))
        _, hs = jax.lax.scan(step, init, xs)
        return hs[::-1] if reverse else hs

    feats = jnp.concatenate([run_dir(wih_f, whh_f, b_f, False),
                             run_dir(wih_b, whh_b, b_b, True)], axis=1)
    h = feats @ w1t + b1
    h = jnp.where(h > 0, h, jnp.expm1(h))                 # F.elu (alpha=1)
    logits = h @ w2t + b2
    logp = jax.nn.log_softmax(logits, axis=1)
    loss = -jnp.mean(logp[jnp.arange(logits.shape[0]), tgt])
    return loss, logits


if __name__ == "__main__":
    # Small sizes consistent with the module:
    #   N = 8 graph nodes, init_hidden_size D = 32, hidden_size = 32, num_class = 8
    N, D, HID, C = 8, 32, 32, 8
    HD = D // 2                     # per-direction LSTM hidden
    s = 0.1

    key = jax.random.PRNGKey(0)
    ks = jax.random.split(key, 12)
    x = jax.random.normal(ks[0], (N, D), jnp.float32)              # node_emb
    wih_f = s * jax.random.normal(ks[1], (D, 4 * HD), jnp.float32)
    whh_f = s * jax.random.normal(ks[2], (HD, 4 * HD), jnp.float32)
    b_f = s * jax.random.normal(ks[3], (1, 4 * HD), jnp.float32)
    wih_b = s * jax.random.normal(ks[4], (D, 4 * HD), jnp.float32)
    whh_b = s * jax.random.normal(ks[5], (HD, 4 * HD), jnp.float32)
    b_b = s * jax.random.normal(ks[6], (1, 4 * HD), jnp.float32)
    w1t = s * jax.random.normal(ks[7], (D, HID), jnp.float32)      # linear1 (transposed)
    b1 = s * jax.random.normal(ks[8], (1, HID), jnp.float32)
    w2t = s * jax.random.normal(ks[9], (HID, C), jnp.float32)      # linear1_ (transposed)
    b2 = s * jax.random.normal(ks[10], (1, C), jnp.float32)
    tgt = jax.random.randint(ks[11], (N,), 0, C, jnp.int32)        # cat(tgt_tags)

    lstm_params = (wih_f, whh_f, b_f, wih_b, whh_b, b_b)
    loss, logits = sentence_bilstm_forward(x, lstm_params, w1t, b1, w2t, b2, tgt)
    jax.block_until_ready((loss, logits))

    ref_loss, ref_logits = ref_forward(x, lstm_params, w1t, b1, w2t, b2, tgt)
    np.testing.assert_allclose(np.asarray(logits), np.asarray(ref_logits),
                               rtol=2e-2, atol=2e-2)
    np.testing.assert_allclose(float(loss), float(ref_loss), rtol=2e-2, atol=2e-2)

    print("KERNEL_OK")
</pallas_src>

<mosaic_0001>
module attributes {stable_mosaic.version = 11 : i64} {
  func.func @_fused_kernel(%arg0: memref<8x32xf32, #tpu.memory_space<vmem>>, %arg1: memref<32x128xbf16, #tpu.memory_space<vmem>>, %arg2: memref<32x128xbf16, #tpu.memory_space<vmem>>, %arg3: memref<1x128xf32, #tpu.memory_space<vmem>>, %arg4: memref<16x32xbf16, #tpu.memory_space<vmem>>, %arg5: memref<16x32xbf16, #tpu.memory_space<vmem>>, %arg6: memref<1x32xf32, #tpu.memory_space<vmem>>, %arg7: memref<32x128xbf16, #tpu.memory_space<vmem>>, %arg8: memref<1x128xf32, #tpu.memory_space<vmem>>, %arg9: memref<8x1xi32, #tpu.memory_space<vmem>>, %arg10: memref<8x128xf32, #tpu.memory_space<vmem>>, %arg11: memref<1x1xf32, #tpu.memory_space<vmem>>, %arg12: memref<8x128xf32, #tpu.memory_space<vmem>>, %arg13: memref<8x16xf32, #tpu.memory_space<vmem>>, %arg14: memref<8x16xf32, #tpu.memory_space<vmem>>) attributes {dimension_semantics = [], scalar_prefetch = 0 : i64, scratch_operands = 3 : i64, tpu.core_type = #tpu.core_type<tc>} {
    %c0 = arith.constant 0 : index
    %c0_0 = arith.constant 0 : index
    %0 = vector.load %arg0[%c0, %c0_0] : memref<8x32xf32, #tpu.memory_space<vmem>>, vector<8x32xf32>
    %1 = arith.truncf %0 : vector<8x32xf32> to vector<8x32xbf16>
    %c0_1 = arith.constant 0 : index
    %c0_2 = arith.constant 0 : index
    %2 = vector.load %arg1[%c0_1, %c0_2] : memref<32x128xbf16, #tpu.memory_space<vmem>>, vector<32x128xbf16>
    %cst = arith.constant dense<0.000000e+00> : vector<8x128xf32>
    %3 = tpu.matmul %1, %2, %cst {dimension_numbers = #tpu.dot_dimension_numbers<[1], [0], [0], [1], [0, 0, 1, 1], [], []>} : vector<8x32xbf16>, vector<32x128xbf16>, vector<8x128xf32> -> vector<8x128xf32>
    %c0_3 = arith.constant 0 : index
    %c0_4 = arith.constant 0 : index
    %4 = vector.load %arg3[%c0_3, %c0_4] : memref<1x128xf32, #tpu.memory_space<vmem>>, vector<1x128xf32>
    %5 = vector.broadcast %4 : vector<1x128xf32> to vector<8x128xf32>
    %6 = arith.addf %3, %5 : vector<8x128xf32>
    %c0_5 = arith.constant 0 : index
    %c0_6 = arith.constant 0 : index
    %7 = vector.load %arg12[%c0_5, %c0_6] : memref<8x128xf32, #tpu.memory_space<vmem>>, vector<8x128xf32>
    tpu.vector_store %arg12[%c0_5, %c0_6], %6 {strides = array<i32>} : memref<8x128xf32, #tpu.memory_space<vmem>>, vector<8x128xf32>,
    %c0_7 = arith.constant 0 : index
    %c0_8 = arith.constant 0 : index
    %8 = vector.load %arg2[%c0_7, %c0_8] : memref<32x128xbf16, #tpu.memory_space<vmem>>, vector<32x128xbf16>
    %9 = tpu.iota {dimensions = array<i32: 1>} : vector<1x128xi32>
    %c32_i32 = arith.constant 32 : i32
    %c0_i32 = arith.constant 0 : i32
    %10 = arith.cmpi eq, %c32_i32, %c0_i32 : i32
    %c1_i32 = arith.constant 1 : i32
    %11 = arith.select %10, %c1_i32, %c32_i32 : i32
    %12 = vector.broadcast %11 : i32 to vector<1x128xi32>
    %13 = arith.remsi %9, %12 : vector<1x128xi32>
    %c0_i32_9 = arith.constant 0 : i32
    %14 = vector.broadcast %c0_i32_9 : i32 to vector<1x128xi32>
    %15 = arith.cmpi ne, %13, %14 : vector<1x128xi32>
    %c0_i32_10 = arith.constant 0 : i32
    %16 = vector.broadcast %c0_i32_10 : i32 to vector<1x128xi32>
    %17 = arith.cmpi slt, %13, %16 : vector<1x128xi32>
    %c0_i32_11 = arith.constant 0 : i32
    %18 = arith.cmpi slt, %11, %c0_i32_11 : i32
    %19 = vector.broadcast %18 : i1 to vector<1x128xi1>
    %20 = vector.broadcast %19 : vector<1x128xi1> to vector<1x128xi1>
    %21 = arith.xori %17, %20 : vector<1x128xi1>
    %22 = arith.andi %21, %15 : vector<1x128xi1>
    %23 = vector.broadcast %11 : i32 to vector<1x128xi32>
    %24 = arith.addi %13, %23 : vector<1x128xi32>
    %25 = arith.select %22, %24, %13 : vector<1x128xi1>, vector<1x128xi32>
    %c16_i32 = arith.constant 16 : i32
    %26 = vector.broadcast %c16_i32 : i32 to vector<1x128xi32>
    %27 = arith.cmpi slt, %25, %26 : vector<1x128xi32>
    %cst_12 = arith.constant 0.000000e+00 : f32
    %28 = vector.broadcast %cst_12 : f32 to vector<1x32xf32>
    %cst_13 = arith.constant 0.000000e+00 : f32
    %29 = vector.broadcast %cst_13 : f32 to vector<1x32xf32>
    %c0_i32_14 = arith.constant 0 : i32
    %30 = arith.index_cast %c0_i32_14 : i32 to index
    %c0_15 = arith.constant 0 : index
    %31 = vector.load %arg12[%30, %c0_15] : memref<8x128xf32, #tpu.memory_space<vmem>>, vector<1x128xf32>
    %c7_i32 = arith.constant 7 : i32
    %32 = arith.subi %c7_i32, %c0_i32_14 : i32
    %33 = arith.index_cast %32 : i32 to index
    %c0_16 = arith.constant 0 : index
    %34 = vector.load %arg12[%33, %c0_16] : memref<8x128xf32, #tpu.memory_space<vmem>>, vector<1x128xf32>
    %35 = arith.select %27, %31, %34 : vector<1x128xi1>, vector<1x128xf32>
    %36 = arith.truncf %28 : vector<1x32xf32> to vector<1x32xbf16>
    %cst_17 = arith.constant dense<0.000000e+00> : vector<1x128xf32>
    %37 = tpu.matmul %36, %8, %cst_17 {dimension_numbers = #tpu.dot_dimension_numbers<[1], [0], [0], [1], [0, 0, 1, 1], [], []>} : vector<1x32xbf16>, vector<32x128xbf16>, vector<1x128xf32> -> vector<1x128xf32>
    %38 = arith.addf %35, %37 : vector<1x128xf32>
    %39 = arith.negf %38 : vector<1x128xf32>
    %40 = math.exp %39 : vector<1x128xf32>
    %cst_18 = arith.constant 1.000000e+00 : f32
    %41 = vector.broadcast %cst_18 : f32 to vector<1x128xf32>
    %42 = arith.addf %41, %40 : vector<1x128xf32>
    %43 = arith.divf %41, %42 : vector<1x128xf32>
    %44 = vector.extract_strided_slice %43 {offsets = [0, 0], sizes = [1, 32], strides = [1, 1]} : vector<1x128xf32> to vector<1x32xf32>
    %45 = vector.extract_strided_slice %43 {offsets = [0, 32], sizes = [1, 32], strides = [1, 1]} : vector<1x128xf32> to vector<1x32xf32>
    %46 = vector.extract_strided_slice %38 {offsets = [0, 64], sizes = [1, 32], strides = [1, 1]} : vector<1x128xf32> to vector<1x32xf32>
    %47 = math.tanh %46 : vector<1x32xf32>
    %48 = vector.extract_strided_slice %43 {offsets = [0, 96], sizes = [1, 32], strides = [1, 1]} : vector<1x128xf32> to vector<1x32xf32>
    %49 = arith.mulf %45, %29 : vector<1x32xf32>
    %50 = arith.mulf %44, %47 : vector<1x32xf32>
    %51 = arith.addf %49, %50 : vector<1x32xf32>
    %52 = math.tanh %51 : vector<1x32xf32>
    %53 = arith.mulf %48, %52 : vector<1x32xf32>
    %54 = vector.extract_strided_slice %53 {offsets = [0, 0], sizes = [1, 16], strides = [1, 1]} : vector<1x32xf32> to vector<1x16xf32>
    %55 = arith.index_cast %c0_i32_14 : i32 to index
    %c0_19 = arith.constant 0 : index
    %56 = vector.load %arg13[%55, %c0_19] : memref<8x16xf32, #tpu.memory_space<vmem>>, vector<1x16xf32>
    tpu.vector_store %arg13[%55, %c0_19], %54 {strides = array<i32>} : memref<8x16xf32, #tpu.memory_space<vmem>>, vector<1x16xf32>,
    %57 = vector.extract_strided_slice %53 {offsets = [0, 16], sizes = [1, 16], strides = [1, 1]} : vector<1x32xf32> to vector<1x16xf32>
    %c7_i32_20 = arith.constant 7 : i32
    %58 = arith.subi %c7_i32_20, %c0_i32_14 : i32
    %59 = arith.index_cast %58 : i32 to index
    %c0_21 = arith.constant 0 : index
    %60 = vector.load %arg14[%59, %c0_21] : memref<8x16xf32, #tpu.memory_space<vmem>>, vector<1x16xf32>
    tpu.vector_store %arg14[%59, %c0_21], %57 {strides = array<i32>} : memref<8x16xf32, #tpu.memory_space<vmem>>, vector<1x16xf32>,
    %c1_i32_22 = arith.constant 1 : i32
    %61 = arith.index_cast %c1_i32_22 : i32 to index
    %c0_23 = arith.constant 0 : index
    %62 = vector.load %arg12[%61, %c0_23] : memref<8x128xf32, #tpu.memory_space<vmem>>, vector<1x128xf32>
    %c7_i32_24 = arith.constant 7 : i32
    %63 = arith.subi %c7_i32_24, %c1_i32_22 : i32
    %64 = arith.index_cast %63 : i32 to index
    %c0_25 = arith.constant 0 : index
    %65 = vector.load %arg12[%64, %c0_25] : memref<8x128xf32, #tpu.memory_space<vmem>>, vector<1x128xf32>
    %66 = arith.select %27, %62, %65 : vector<1x128xi1>, vector<1x128xf32>
    %67 = arith.truncf %53 : vector<1x32xf32> to vector<1x32xbf16>
    %cst_26 = arith.constant dense<0.000000e+00> : vector<1x128xf32>
    %68 = tpu.matmul %67, %8, %cst_26 {dimension_numbers = #tpu.dot_dimension_numbers<[1], [0], [0], [1], [0, 0, 1, 1], [], []>} : vector<1x32xbf16>, vector<32x128xbf16>, vector<1x128xf32> -> vector<1x128xf32>
    %69 = arith.addf %66, %68 : vector<1x128xf32>
    %70 = arith.negf %69 : vector<1x128xf32>
    %71 = math.exp %70 : vector<1x128xf32>
    %cst_27 = arith.constant 1.000000e+00 : f32
    %72 = vector.broadcast %cst_27 : f32 to vector<1x128xf32>
    %73 = arith.addf %72, %71 : vector<1x128xf32>
    %74 = arith.divf %72, %73 : vector<1x128xf32>
    %75 = vector.extract_strided_slice %74 {offsets = [0, 0], sizes = [1, 32], strides = [1, 1]} : vector<1x128xf32> to vector<1x32xf32>
    %76 = vector.extract_strided_slice %74 {offsets = [0, 32], sizes = [1, 32], strides = [1, 1]} : vector<1x128xf32> to vector<1x32xf32>
    %77 = vector.extract_strided_slice %69 {offsets = [0, 64], sizes = [1, 32], strides = [1, 1]} : vector<1x128xf32> to vector<1x32xf32>
    %78 = math.tanh %77 : vector<1x32xf32>
    %79 = vector.extract_strided_slice %74 {offsets = [0, 96], sizes = [1, 32], strides = [1, 1]} : vector<1x128xf32> to vector<1x32xf32>
    %80 = arith.mulf %76, %51 : vector<1x32xf32>
    %81 = arith.mulf %75, %78 : vector<1x32xf32>
    %82 = arith.addf %80, %81 : vector<1x32xf32>
    %83 = math.tanh %82 : vector<1x32xf32>
    %84 = arith.mulf %79, %83 : vector<1x32xf32>
    %85 = vector.extract_strided_slice %84 {offsets = [0, 0], sizes = [1, 16], strides = [1, 1]} : vector<1x32xf32> to vector<1x16xf32>
    %86 = arith.index_cast %c1_i32_22 : i32 to index
    %c0_28 = arith.constant 0 : index
    %87 = vector.load %arg13[%86, %c0_28] : memref<8x16xf32, #tpu.memory_space<vmem>>, vector<1x16xf32>
    tpu.vector_store %arg13[%86, %c0_28], %85 {strides = array<i32>} : memref<8x16xf32, #tpu.memory_space<vmem>>, vector<1x16xf32>,
    %88 = vector.extract_strided_slice %84 {offsets = [0, 16], sizes = [1, 16], strides = [1, 1]} : vector<1x32xf32> to vector<1x16xf32>
    %c7_i32_29 = arith.constant 7 : i32
    %89 = arith.subi %c7_i32_29, %c1_i32_22 : i32
    %90 = arith.index_cast %89 : i32 to index
    %c0_30 = arith.constant 0 : index
    %91 = vector.load %arg14[%90, %c0_30] : memref<8x16xf32, #tpu.memory_space<vmem>>, vector<1x16xf32>
    tpu.vector_store %arg14[%90, %c0_30], %88 {strides = array<i32>} : memref<8x16xf32, #tpu.memory_space<vmem>>, vector<1x16xf32>,
    %c2_i32 = arith.constant 2 : i32
    %92 = arith.index_cast %c2_i32 : i32 to index
    %c0_31 = arith.constant 0 : index
    %93 = vector.load %arg12[%92, %c0_31] : memref<8x128xf32, #tpu.memory_space<vmem>>, vector<1x128xf32>
    %c7_i32_32 = arith.constant 7 : i32
    %94 = arith.subi %c7_i32_32, %c2_i32 : i32
    %95 = arith.index_cast %94 : i32 to index
    %c0_33 = arith.constant 0 : index
    %96 = vector.load %arg12[%95, %c0_33] : memref<8x128xf32, #tpu.memory_space<vmem>>, vector<1x128xf32>
    %97 = arith.select %27, %93, %96 : vector<1x128xi1>, vector<1x128xf32>
    %98 = arith.truncf %84 : vector<1x32xf32> to vector<1x32xbf16>
    %cst_34 = arith.constant dense<0.000000e+00> : vector<1x128xf32>
    %99 = tpu.matmul %98, %8, %cst_34 {dimension_numbers = #tpu.dot_dimension_numbers<[1], [0], [0], [1], [0, 0, 1, 1], [], []>} : vector<1x32xbf16>, vector<32x128xbf16>, vector<1x128xf32> -> vector<1x128xf32>
    %100 = arith.addf %97, %99 : vector<1x128xf32>
    %101 = arith.negf %100 : vector<1x128xf32>
    %102 = math.exp %101 : vector<1x128xf32>
    %cst_35 = arith.constant 1.000000e+00 : f32
    %103 = vector.broadcast %cst_35 : f32 to vector<1x128xf32>
    %104 = arith.addf %103, %102 : vector<1x128xf32>
    %105 = arith.divf %103, %104 : vector<1x128xf32>
    %106 = vector.extract_strided_slice %105 {offsets = [0, 0], sizes = [1, 32], strides = [1, 1]} : vector<1x128xf32> to vector<1x32xf32>
    %107 = vector.extract_strided_slice %105 {offsets = [0, 32], sizes = [1, 32], strides = [1, 1]} : vector<1x128xf32> to vector<1x32xf32>
    %108 = vector.extract_strided_slice %100 {offsets = [0, 64], sizes = [1, 32], strides = [1, 1]} : vector<1x128xf32> to vector<1x32xf32>
    %109 = math.tanh %108 : vector<1x32xf32>
    %110 = vector.extract_strided_slice %105 {offsets = [0, 96], sizes = [1, 32], strides = [1, 1]} : vector<1x128xf32> to vector<1x32xf32>
    %111 = arith.mulf %107, %82 : vector<1x32xf32>
    %112 = arith.mulf %106, %109 : vector<1x32xf32>
    %113 = arith.addf %111, %112 : vector<1x32xf32>
    %114 = math.tanh %113 : vector<1x32xf32>
    %115 = arith.mulf %110, %114 : vector<1x32xf32>
    %116 = vector.extract_strided_slice %115 {offsets = [0, 0], sizes = [1, 16], strides = [1, 1]} : vector<1x32xf32> to vector<1x16xf32>
    %117 = arith.index_cast %c2_i32 : i32 to index
    %c0_36 = arith.constant 0 : index
    %118 = vector.load %arg13[%117, %c0_36] : memref<8x16xf32, #tpu.memory_space<vmem>>, vector<1x16xf32>
    tpu.vector_store %arg13[%117, %c0_36], %116 {strides = array<i32>} : memref<8x16xf32, #tpu.memory_space<vmem>>, vector<1x16xf32>,
    %119 = vector.extract_strided_slice %115 {offsets = [0, 16], sizes = [1, 16], strides = [1, 1]} : vector<1x32xf32> to vector<1x16xf32>
    %c7_i32_37 = arith.constant 7 : i32
    %120 = arith.subi %c7_i32_37, %c2_i32 : i32
    %121 = arith.index_cast %120 : i32 to index
    %c0_38 = arith.constant 0 : index
    %122 = vector.load %arg14[%121, %c0_38] : memref<8x16xf32, #tpu.memory_space<vmem>>, vector<1x16xf32>
    tpu.vector_store %arg14[%121, %c0_38], %119 {strides = array<i32>} : memref<8x16xf32, #tpu.memory_space<vmem>>, vector<1x16xf32>,
    %c3_i32 = arith.constant 3 : i32
    %123 = arith.index_cast %c3_i32 : i32 to index
    %c0_39 = arith.constant 0 : index
    %124 = vector.load %arg12[%123, %c0_39] : memref<8x128xf32, #tpu.memory_space<vmem>>, vector<1x128xf32>
    %c7_i32_40 = arith.constant 7 : i32
    %125 = arith.subi %c7_i32_40, %c3_i32 : i32
    %126 = arith.index_cast %125 : i32 to index
    %c0_41 = arith.constant 0 : index
    %127 = vector.load %arg12[%126, %c0_41] : memref<8x128xf32, #tpu.memory_space<vmem>>, vector<1x128xf32>
    %128 = arith.select %27, %124, %127 : vector<1x128xi1>, vector<1x128xf32>
    %129 = arith.truncf %115 : vector<1x32xf32> to vector<1x32xbf16>
    %cst_42 = arith.constant dense<0.000000e+00> : vector<1x128xf32>
    %130 = tpu.matmul %129, %8, %cst_42 {dimension_numbers = #tpu.dot_dimension_numbers<[1], [0], [0], [1], [0, 0, 1, 1], [], []>} : vector<1x32xbf16>, vector<32x128xbf16>, vector<1x128xf32> -> vector<1x128xf32>
    %131 = arith.addf %128, %130 : vector<1x128xf32>
    %132 = arith.negf %131 : vector<1x128xf32>
    %133 = math.exp %132 : vector<1x128xf32>
    %cst_43 = arith.constant 1.000000e+00 : f32
    %134 = vector.broadcast %cst_43 : f32 to vector<1x128xf32>
    %135 = arith.addf %134, %133 : vector<1x128xf32>
    %136 = arith.divf %134, %135 : vector<1x128xf32>
    %137 = vector.extract_strided_slice %136 {offsets = [0, 0], sizes = [1, 32], strides = [1, 1]} : vector<1x128xf32> to vector<1x32xf32>
    %138 = vector.extract_strided_slice %136 {offsets = [0, 32], sizes = [1, 32], strides = [1, 1]} : vector<1x128xf32> to vector<1x32xf32>
    %139 = vector.extract_strided_slice %131 {offsets = [0, 64], sizes = [1, 32], strides = [1, 1]} : vector<1x128xf32> to vector<1x32xf32>
    %140 = math.tanh %139 : vector<1x32xf32>
    %141 = vector.extract_strided_slice %136 {offsets = [0, 96], sizes = [1, 32], strides = [1, 1]} : vector<1x128xf32> to vector<1x32xf32>
    %142 = arith.mulf %138, %113 : vector<1x32xf32>
    %143 = arith.mulf %137, %140 : vector<1x32xf32>
    %144 = arith.addf %142, %143 : vector<1x32xf32>
    %145 = math.tanh %144 : vector<1x32xf32>
    %146 = arith.mulf %141, %145 : vector<1x32xf32>
    %147 = vector.extract_strided_slice %146 {offsets = [0, 0], sizes = [1, 16], strides = [1, 1]} : vector<1x32xf32> to vector<1x16xf32>
    %148 = arith.index_cast %c3_i32 : i32 to index
    %c0_44 = arith.constant 0 : index
    %149 = vector.load %arg13[%148, %c0_44] : memref<8x16xf32, #tpu.memory_space<vmem>>, vector<1x16xf32>
    tpu.vector_store %arg13[%148, %c0_44], %147 {strides = array<i32>} : memref<8x16xf32, #tpu.memory_space<vmem>>, vector<1x16xf32>,
    %150 = vector.extract_strided_slice %146 {offsets = [0, 16], sizes = [1, 16], strides = [1, 1]} : vector<1x32xf32> to vector<1x16xf32>
    %c7_i32_45 = arith.constant 7 : i32
    %151 = arith.subi %c7_i32_45, %c3_i32 : i32
    %152 = arith.index_cast %151 : i32 to index
    %c0_46 = arith.constant 0 : index
    %153 = vector.load %arg14[%152, %c0_46] : memref<8x16xf32, #tpu.memory_space<vmem>>, vector<1x16xf32>
    tpu.vector_store %arg14[%152, %c0_46], %150 {strides = array<i32>} : memref<8x16xf32, #tpu.memory_space<vmem>>, vector<1x16xf32>,
    %c4_i32 = arith.constant 4 : i32
    %154 = arith.index_cast %c4_i32 : i32 to index
    %c0_47 = arith.constant 0 : index
    %155 = vector.load %arg12[%154, %c0_47] : memref<8x128xf32, #tpu.memory_space<vmem>>, vector<1x128xf32>
    %c7_i32_48 = arith.constant 7 : i32
    %156 = arith.subi %c7_i32_48, %c4_i32 : i32
    %157 = arith.index_cast %156 : i32 to index
    %c0_49 = arith.constant 0 : index
    %158 = vector.load %arg12[%157, %c0_49] : memref<8x128xf32, #tpu.memory_space<vmem>>, vector<1x128xf32>
    %159 = arith.select %27, %155, %158 : vector<1x128xi1>, vector<1x128xf32>
    %160 = arith.truncf %146 : vector<1x32xf32> to vector<1x32xbf16>
    %cst_50 = arith.constant dense<0.000000e+00> : vector<1x128xf32>
    %161 = tpu.matmul %160, %8, %cst_50 {dimension_numbers = #tpu.dot_dimension_numbers<[1], [0], [0], [1], [0, 0, 1, 1], [], []>} : vector<1x32xbf16>, vector<32x128xbf16>, vector<1x128xf32> -> vector<1x128xf32>
    %162 = arith.addf %159, %161 : vector<1x128xf32>
    %163 = arith.negf %162 : vector<1x128xf32>
    %164 = math.exp %163 : vector<1x128xf32>
    %cst_51 = arith.constant 1.000000e+00 : f32
    %165 = vector.broadcast %cst_51 : f32 to vector<1x128xf32>
    %166 = arith.addf %165, %164 : vector<1x128xf32>
    %167 = arith.divf %165, %166 : vector<1x128xf32>
    %168 = vector.extract_strided_slice %167 {offsets = [0, 0], sizes = [1, 32], strides = [1, 1]} : vector<1x128xf32> to vector<1x32xf32>
    %169 = vector.extract_strided_slice %167 {offsets = [0, 32], sizes = [1, 32], strides = [1, 1]} : vector<1x128xf32> to vector<1x32xf32>
    %170 = vector.extract_strided_slice %162 {offsets = [0, 64], sizes = [1, 32], strides = [1, 1]} : vector<1x128xf32> to vector<1x32xf32>
    %171 = math.tanh %170 : vector<1x32xf32>
    %172 = vector.extract_strided_slice %167 {offsets = [0, 96], sizes = [1, 32], strides = [1, 1]} : vector<1x128xf32> to vector<1x32xf32>
    %173 = arith.mulf %169, %144 : vector<1x32xf32>
    %174 = arith.mulf %168, %171 : vector<1x32xf32>
    %175 = arith.addf %173, %174 : vector<1x32xf32>
    %176 = math.tanh %175 : vector<1x32xf32>
    %177 = arith.mulf %172, %176 : vector<1x32xf32>
    %178 = vector.extract_strided_slice %177 {offsets = [0, 0], sizes = [1, 16], strides = [1, 1]} : vector<1x32xf32> to vector<1x16xf32>
    %179 = arith.index_cast %c4_i32 : i32 to index
    %c0_52 = arith.constant 0 : index
    %180 = vector.load %arg13[%179, %c0_52] : memref<8x16xf32, #tpu.memory_space<vmem>>, vector<1x16xf32>
    tpu.vector_store %arg13[%179, %c0_52], %178 {strides = array<i32>} : memref<8x16xf32, #tpu.memory_space<vmem>>, vector<1x16xf32>,
    %181 = vector.extract_strided_slice %177 {offsets = [0, 16], sizes = [1, 16], strides = [1, 1]} : vector<1x32xf32> to vector<1x16xf32>
    %c7_i32_53 = arith.constant 7 : i32
    %182 = arith.subi %c7_i32_53, %c4_i32 : i32
    %183 = arith.index_cast %182 : i32 to index
    %c0_54 = arith.constant 0 : index
    %184 = vector.load %arg14[%183, %c0_54] : memref<8x16xf32, #tpu.memory_space<vmem>>, vector<1x16xf32>
    tpu.vector_store %arg14[%183, %c0_54], %181 {strides = array<i32>} : memref<8x16xf32, #tpu.memory_space<vmem>>, vector<1x16xf32>,
    %c5_i32 = arith.constant 5 : i32
    %185 = arith.index_cast %c5_i32 : i32 to index
    %c0_55 = arith.constant 0 : index
    %186 = vector.load %arg12[%185, %c0_55] : memref<8x128xf32, #tpu.memory_space<vmem>>, vector<1x128xf32>
    %c7_i32_56 = arith.constant 7 : i32
    %187 = arith.subi %c7_i32_56, %c5_i32 : i32
    %188 = arith.index_cast %187 : i32 to index
    %c0_57 = arith.constant 0 : index
    %189 = vector.load %arg12[%188, %c0_57] : memref<8x128xf32, #tpu.memory_space<vmem>>, vector<1x128xf32>
    %190 = arith.select %27, %186, %189 : vector<1x128xi1>, vector<1x128xf32>
    %191 = arith.truncf %177 : vector<1x32xf32> to vector<1x32xbf16>
    %cst_58 = arith.constant dense<0.000000e+00> : vector<1x128xf32>
    %192 = tpu.matmul %191, %8, %cst_58 {dimension_numbers = #tpu.dot_dimension_numbers<[1], [0], [0], [1], [0, 0, 1, 1], [], []>} : vector<1x32xbf16>, vector<32x128xbf16>, vector<1x128xf32> -> vector<1x128xf32>
    %193 = arith.addf %190, %192 : vector<1x128xf32>
    %194 = arith.negf %193 : vector<1x128xf32>
    %195 = math.exp %194 : vector<1x128xf32>
    %cst_59 = arith.constant 1.000000e+00 : f32
    %196 = vector.broadcast %cst_59 : f32 to vector<1x128xf32>
    %197 = arith.addf %196, %195 : vector<1x128xf32>
    %198 = arith.divf %196, %197 : vector<1x128xf32>
    %199 = vector.extract_strided_slice %198 {offsets = [0, 0], sizes = [1, 32], strides = [1, 1]} : vector<1x128xf32> to vector<1x32xf32>
    %200 = vector.extract_strided_slice %198 {offsets = [0, 32], sizes = [1, 32], strides = [1, 1]} : vector<1x128xf32> to vector<1x32xf32>
    %201 = vector.extract_strided_slice %193 {offsets = [0, 64], sizes = [1, 32], strides = [1, 1]} : vector<1x128xf32> to vector<1x32xf32>
    %202 = math.tanh %201 : vector<1x32xf32>
    %203 = vector.extract_strided_slice %198 {offsets = [0, 96], sizes = [1, 32], strides = [1, 1]} : vector<1x128xf32> to vector<1x32xf32>
    %204 = arith.mulf %200, %175 : vector<1x32xf32>
    %205 = arith.mulf %199, %202 : vector<1x32xf32>
    %206 = arith.addf %204, %205 : vector<1x32xf32>
    %207 = math.tanh %206 : vector<1x32xf32>
    %208 = arith.mulf %203, %207 : vector<1x32xf32>
    %209 = vector.extract_strided_slice %208 {offsets = [0, 0], sizes = [1, 16], strides = [1, 1]} : vector<1x32xf32> to vector<1x16xf32>
    %210 = arith.index_cast %c5_i32 : i32 to index
    %c0_60 = arith.constant 0 : index
    %211 = vector.load %arg13[%210, %c0_60] : memref<8x16xf32, #tpu.memory_space<vmem>>, vector<1x16xf32>
    tpu.vector_store %arg13[%210, %c0_60], %209 {strides = array<i32>} : memref<8x16xf32, #tpu.memory_space<vmem>>, vector<1x16xf32>,
    %212 = vector.extract_strided_slice %208 {offsets = [0, 16], sizes = [1, 16], strides = [1, 1]} : vector<1x32xf32> to vector<1x16xf32>
    %c7_i32_61 = arith.constant 7 : i32
    %213 = arith.subi %c7_i32_61, %c5_i32 : i32
    %214 = arith.index_cast %213 : i32 to index
    %c0_62 = arith.constant 0 : index
    %215 = vector.load %arg14[%214, %c0_62] : memref<8x16xf32, #tpu.memory_space<vmem>>, vector<1x16xf32>
    tpu.vector_store %arg14[%214, %c0_62], %212 {strides = array<i32>} : memref<8x16xf32, #tpu.memory_space<vmem>>, vector<1x16xf32>,
    %c6_i32 = arith.constant 6 : i32
    %216 = arith.index_cast %c6_i32 : i32 to index
    %c0_63 = arith.constant 0 : index
    %217 = vector.load %arg12[%216, %c0_63] : memref<8x128xf32, #tpu.memory_space<vmem>>, vector<1x128xf32>
    %c7_i32_64 = arith.constant 7 : i32
    %218 = arith.subi %c7_i32_64, %c6_i32 : i32
    %219 = arith.index_cast %218 : i32 to index
    %c0_65 = arith.constant 0 : index
    %220 = vector.load %arg12[%219, %c0_65] : memref<8x128xf32, #tpu.memory_space<vmem>>, vector<1x128xf32>
    %221 = arith.select %27, %217, %220 : vector<1x128xi1>, vector<1x128xf32>
    %222 = arith.truncf %208 : vector<1x32xf32> to vector<1x32xbf16>
    %cst_66 = arith.constant dense<0.000000e+00> : vector<1x128xf32>
    %223 = tpu.matmul %222, %8, %cst_66 {dimension_numbers = #tpu.dot_dimension_numbers<[1], [0], [0], [1], [0, 0, 1, 1], [], []>} : vector<1x32xbf16>, vector<32x128xbf16>, vector<1x128xf32> -> vector<1x128xf32>
    %224 = arith.addf %221, %223 : vector<1x128xf32>
    %225 = arith.negf %224 : vector<1x128xf32>
    %226 = math.exp %225 : vector<1x128xf32>
    %cst_67 = arith.constant 1.000000e+00 : f32
    %227 = vector.broadcast %cst_67 : f32 to vector<1x128xf32>
    %228 = arith.addf %227, %226 : vector<1x128xf32>
    %229 = arith.divf %227, %228 : vector<1x128xf32>
    %230 = vector.extract_strided_slice %229 {offsets = [0, 0], sizes = [1, 32], strides = [1, 1]} : vector<1x128xf32> to vector<1x32xf32>
    %231 = vector.extract_strided_slice %229 {offsets = [0, 32], sizes = [1, 32], strides = [1, 1]} : vector<1x128xf32> to vector<1x32xf32>
    %232 = vector.extract_strided_slice %224 {offsets = [0, 64], sizes = [1, 32], strides = [1, 1]} : vector<1x128xf32> to vector<1x32xf32>
    %233 = math.tanh %232 : vector<1x32xf32>
    %234 = vector.extract_strided_slice %229 {offsets = [0, 96], sizes = [1, 32], strides = [1, 1]} : vector<1x128xf32> to vector<1x32xf32>
    %235 = arith.mulf %231, %206 : vector<1x32xf32>
    %236 = arith.mulf %230, %233 : vector<1x32xf32>
    %237 = arith.addf %235, %236 : vector<1x32xf32>
    %238 = math.tanh %237 : vector<1x32xf32>
    %239 = arith.mulf %234, %238 : vector<1x32xf32>
    %240 = vector.extract_strided_slice %239 {offsets = [0, 0], sizes = [1, 16], strides = [1, 1]} : vector<1x32xf32> to vector<1x16xf32>
    %241 = arith.index_cast %c6_i32 : i32 to index
    %c0_68 = arith.constant 0 : index
    %242 = vector.load %arg13[%241, %c0_68] : memref<8x16xf32, #tpu.memory_space<vmem>>, vector<1x16xf32>
    tpu.vector_store %arg13[%241, %c0_68], %240 {strides = array<i32>} : memref<8x16xf32, #tpu.memory_space<vmem>>, vector<1x16xf32>,
    %243 = vector.extract_strided_slice %239 {offsets = [0, 16], sizes = [1, 16], strides = [1, 1]} : vector<1x32xf32> to vector<1x16xf32>
    %c7_i32_69 = arith.constant 7 : i32
    %244 = arith.subi %c7_i32_69, %c6_i32 : i32
    %245 = arith.index_cast %244 : i32 to index
    %c0_70 = arith.constant 0 : index
    %246 = vector.load %arg14[%245, %c0_70] : memref<8x16xf32, #tpu.memory_space<vmem>>, vector<1x16xf32>
    tpu.vector_store %arg14[%245, %c0_70], %243 {strides = array<i32>} : memref<8x16xf32, #tpu.memory_space<vmem>>, vector<1x16xf32>,
    %c7_i32_71 = arith.constant 7 : i32
    %247 = arith.index_cast %c7_i32_71 : i32 to index
    %c0_72 = arith.constant 0 : index
    %248 = vector.load %arg12[%247, %c0_72] : memref<8x128xf32, #tpu.memory_space<vmem>>, vector<1x128xf32>
    %c7_i32_73 = arith.constant 7 : i32
    %249 = arith.subi %c7_i32_73, %c7_i32_71 : i32
    %250 = arith.index_cast %249 : i32 to index
    %c0_74 = arith.constant 0 : index
    %251 = vector.load %arg12[%250, %c0_74] : memref<8x128xf32, #tpu.memory_space<vmem>>, vector<1x128xf32>
    %252 = arith.select %27, %248, %251 : vector<1x128xi1>, vector<1x128xf32>
    %253 = arith.truncf %239 : vector<1x32xf32> to vector<1x32xbf16>
    %cst_75 = arith.constant dense<0.000000e+00> : vector<1x128xf32>
    %254 = tpu.matmul %253, %8, %cst_75 {dimension_numbers = #tpu.dot_dimension_numbers<[1], [0], [0], [1], [0, 0, 1, 1], [], []>} : vector<1x32xbf16>, vector<32x128xbf16>, vector<1x128xf32> -> vector<1x128xf32>
    %255 = arith.addf %252, %254 : vector<1x128xf32>
    %256 = arith.negf %255 : vector<1x128xf32>
    %257 = math.exp %256 : vector<1x128xf32>
    %cst_76 = arith.constant 1.000000e+00 : f32
    %258 = vector.broadcast %cst_76 : f32 to vector<1x128xf32>
    %259 = arith.addf %258, %257 : vector<1x128xf32>
    %260 = arith.divf %258, %259 : vector<1x128xf32>
    %261 = vector.extract_strided_slice %260 {offsets = [0, 0], sizes = [1, 32], strides = [1, 1]} : vector<1x128xf32> to vector<1x32xf32>
    %262 = vector.extract_strided_slice %260 {offsets = [0, 32], sizes = [1, 32], strides = [1, 1]} : vector<1x128xf32> to vector<1x32xf32>
    %263 = vector.extract_strided_slice %255 {offsets = [0, 64], sizes = [1, 32], strides = [1, 1]} : vector<1x128xf32> to vector<1x32xf32>
    %264 = math.tanh %263 : vector<1x32xf32>
    %265 = vector.extract_strided_slice %260 {offsets = [0, 96], sizes = [1, 32], strides = [1, 1]} : vector<1x128xf32> to vector<1x32xf32>
    %266 = arith.mulf %262, %237 : vector<1x32xf32>
    %267 = arith.mulf %261, %264 : vector<1x32xf32>
    %268 = arith.addf %266, %267 : vector<1x32xf32>
    %269 = math.tanh %268 : vector<1x32xf32>
    %270 = arith.mulf %265, %269 : vector<1x32xf32>
    %271 = vector.extract_strided_slice %270 {offsets = [0, 0], sizes = [1, 16], strides = [1, 1]} : vector<1x32xf32> to vector<1x16xf32>
    %272 = arith.index_cast %c7_i32_71 : i32 to index
    %c0_77 = arith.constant 0 : index
    %273 = vector.load %arg13[%272, %c0_77] : memref<8x16xf32, #tpu.memory_space<vmem>>, vector<1x16xf32>
    tpu.vector_store %arg13[%272, %c0_77], %271 {strides = array<i32>} : memref<8x16xf32, #tpu.memory_space<vmem>>, vector<1x16xf32>,
    %274 = vector.extract_strided_slice %270 {offsets = [0, 16], sizes = [1, 16], strides = [1, 1]} : vector<1x32xf32> to vector<1x16xf32>
    %c7_i32_78 = arith.constant 7 : i32
    %275 = arith.subi %c7_i32_78, %c7_i32_71 : i32
    %276 = arith.index_cast %275 : i32 to index
    %c0_79 = arith.constant 0 : index
    %277 = vector.load %arg14[%276, %c0_79] : memref<8x16xf32, #tpu.memory_space<vmem>>, vector<1x16xf32>
    tpu.vector_store %arg14[%276, %c0_79], %274 {strides = array<i32>} : memref<8x16xf32, #tpu.memory_space<vmem>>, vector<1x16xf32>,
    %c8_i32 = arith.constant 8 : i32
    %c0_80 = arith.constant 0 : index
    %c0_81 = arith.constant 0 : index
    %278 = vector.load %arg13[%c0_80, %c0_81] : memref<8x16xf32, #tpu.memory_space<vmem>>, vector<8x16xf32>
    %279 = arith.truncf %278 : vector<8x16xf32> to vector<8x16xbf16>
    %c0_82 = arith.constant 0 : index
    %c0_83 = arith.constant 0 : index
    %280 = vector.load %arg4[%c0_82, %c0_83] : memref<16x32xbf16, #tpu.memory_space<vmem>>, vector<16x32xbf16>
    %cst_84 = arith.constant dense<0.000000e+00> : vector<8x32xf32>
    %281 = tpu.matmul %279, %280, %cst_84 {dimension_numbers = #tpu.dot_dimension_numbers<[1], [0], [0], [1], [0, 0, 1, 1], [], []>} : vector<8x16xbf16>, vector<16x32xbf16>, vector<8x32xf32> -> vector<8x32xf32>
    %c0_85 = arith.constant 0 : index
    %c0_86 = arith.constant 0 : index
    %282 = vector.load %arg14[%c0_85, %c0_86] : memref<8x16xf32, #tpu.memory_space<vmem>>, vector<8x16xf32>
    %283 = arith.truncf %282 : vector<8x16xf32> to vector<8x16xbf16>
    %c0_87 = arith.constant 0 : index
    %c0_88 = arith.constant 0 : index
    %284 = vector.load %arg5[%c0_87, %c0_88] : memref<16x32xbf16, #tpu.memory_space<vmem>>, vector<16x32xbf16>
    %cst_89 = arith.constant dense<0.000000e+00> : vector<8x32xf32>
    %285 = tpu.matmul %283, %284, %cst_89 {dimension_numbers = #tpu.dot_dimension_numbers<[1], [0], [0], [1], [0, 0, 1, 1], [], []>} : vector<8x16xbf16>, vector<16x32xbf16>, vector<8x32xf32> -> vector<8x32xf32>
    %286 = arith.addf %281, %285 : vector<8x32xf32>
    %c0_90 = arith.constant 0 : index
    %c0_91 = arith.constant 0 : index
    %287 = vector.load %arg6[%c0_90, %c0_91] : memref<1x32xf32, #tpu.memory_space<vmem>>, vector<1x32xf32>
    %288 = vector.broadcast %287 : vector<1x32xf32> to vector<8x32xf32>
    %289 = arith.addf %286, %288 : vector<8x32xf32>
    %cst_92 = arith.constant 5.000000e-01 : f32
    %290 = vector.broadcast %cst_92 : f32 to vector<8x32xf32>
    %291 = arith.mulf %290, %289 : vector<8x32xf32>
    %292 = math.tanh %291 : vector<8x32xf32>
    %293 = math.exp %289 : vector<8x32xf32>
    %cst_93 = arith.constant 1.000000e+00 : f32
    %294 = vector.broadcast %cst_93 : f32 to vector<8x32xf32>
    %295 = arith.addf %293, %294 : vector<8x32xf32>
    %296 = arith.mulf %292, %295 : vector<8x32xf32>
    %cst_94 = arith.constant 0.000000e+00 : f32
    %297 = vector.broadcast %cst_94 : f32 to vector<8x32xf32>
    %298 = arith.cmpf ogt, %289, %297 : vector<8x32xf32>
    %299 = arith.select %298, %289, %296 : vector<8x32xi1>, vector<8x32xf32>
    %300 = arith.truncf %299 : vector<8x32xf32> to vector<8x32xbf16>
    %c0_95 = arith.constant 0 : index
    %c0_96 = arith.constant 0 : index
    %301 = vector.load %arg7[%c0_95, %c0_96] : memref<32x128xbf16, #tpu.memory_space<vmem>>, vector<32x128xbf16>
    %cst_97 = arith.constant dense<0.000000e+00> : vector<8x128xf32>
    %302 = tpu.matmul %300, %301, %cst_97 {dimension_numbers = #tpu.dot_dimension_numbers<[1], [0], [0], [1], [0, 0, 1, 1], [], []>} : vector<8x32xbf16>, vector<32x128xbf16>, vector<8x128xf32> -> vector<8x128xf32>
    %c0_98 = arith.constant 0 : index
    %c0_99 = arith.constant 0 : index
    %303 = vector.load %arg8[%c0_98, %c0_99] : memref<1x128xf32, #tpu.memory_space<vmem>>, vector<1x128xf32>
    %304 = vector.broadcast %303 : vector<1x128xf32> to vector<8x128xf32>
    %305 = arith.addf %302, %304 : vector<8x128xf32>
    %c0_100 = arith.constant 0 : index
    %c0_101 = arith.constant 0 : index
    %306 = vector.load %arg10[%c0_100, %c0_101] : memref<8x128xf32, #tpu.memory_space<vmem>>, vector<8x128xf32>
    tpu.vector_store %arg10[%c0_100, %c0_101], %305 {strides = array<i32>} : memref<8x128xf32, #tpu.memory_space<vmem>>, vector<8x128xf32>,
    %cst_102 = arith.constant dense<0xFF800000> : vector<8xf32>
    %307 = vector.multi_reduction <maximumf>, %305, %cst_102 [1] : vector<8x128xf32> to vector<8xf32>
    %308 = vector.shape_cast %307 : vector<8xf32> to vector<8x1xf32>
    %309 = vector.broadcast %308 : vector<8x1xf32> to vector<8x128xf32>
    %310 = arith.subf %305, %309 : vector<8x128xf32>
    %311 = math.exp %310 : vector<8x128xf32>
    %cst_103 = arith.constant dense<0.000000e+00> : vector<8xf32>
    %312 = vector.multi_reduction <add>, %311, %cst_103 [1] : vector<8x128xf32> to vector<8xf32>
    %313 = vector.shape_cast %312 : vector<8xf32> to vector<8x1xf32>
    %314 = math.log %313 : vector<8x1xf32>
    %315 = arith.addf %308, %314 : vector<8x1xf32>
    %316 = vector.broadcast %315 : vector<8x1xf32> to vector<8x128xf32>
    %317 = arith.subf %305, %316 : vector<8x128xf32>
    %318 = tpu.iota {dimensions = array<i32: 1>} : vector<8x128xi32>
    %c0_104 = arith.constant 0 : index
    %c0_105 = arith.constant 0 : index
    %319 = vector.load %arg9[%c0_104, %c0_105] : memref<8x1xi32, #tpu.memory_space<vmem>>, vector<8x1xi32>
    %320 = vector.broadcast %319 : vector<8x1xi32> to vector<8x128xi32>
    %321 = arith.cmpi eq, %318, %320 : vector<8x128xi32>
    %322 = arith.extui %321 : vector<8x128xi1> to vector<8x128xi32>
    %323 = arith.sitofp %322 : vector<8x128xi32> to vector<8x128xf32>
    %324 = arith.mulf %317, %323 : vector<8x128xf32>
    %cst_106 = arith.constant dense<0.000000e+00> : vector<8xf32>
    %325 = vector.multi_reduction <add>, %324, %cst_106 [1] : vector<8x128xf32> to vector<8xf32>
    %326 = vector.shape_cast %325 : vector<8xf32> to vector<8x1xf32>
    %cst_107 = arith.constant dense<0.000000e+00> : vector<1xf32>
    %327 = vector.multi_reduction <add>, %326, %cst_107 [0] : vector<8x1xf32> to vector<1xf32>
    %328 = vector.shape_cast %327 : vector<1xf32> to vector<1x1xf32>
    %cst_108 = arith.constant 8.000000e+00 : f32
    %329 = vector.broadcast %cst_108 : f32 to vector<1x1xf32>
    %330 = arith.divf %328, %329 : vector<1x1xf32>
    %cst_109 = arith.constant 0.000000e+00 : f32
    %331 = vector.broadcast %cst_109 : f32 to vector<1x1xf32>
    %332 = arith.subf %331, %330 : vector<1x1xf32>
    %c0_110 = arith.constant 0 : index
    %c0_111 = arith.constant 0 : index
    %333 = vector.load %arg11[%c0_110, %c0_111] : memref<1x1xf32, #tpu.memory_space<vmem>>, vector<1x1xf32>
    tpu.vector_store %arg11[%c0_110, %c0_111], %332 {strides = array<i32>} : memref<1x1xf32, #tpu.memory_space<vmem>>, vector<1x1xf32>,
    return
  }
}

</mosaic_0001>

<bundles_post_ra>
// kernel: tpu_custom_call.1
= control target key start
LH: loop header
LB: loop body
LE: loop exit
PB: predicated region body
PF: predicated region fallthrough
CT: control target
= control target key end

     0   :  { %17 = vsyncpa [#allocation6], 0  ;;  %s1848_s0 = inlined_call_operand.hbm [shape: f32[8,32], index: 0, kind: input, shape index: {}]   ;;  %s1849_s1 = inlined_call_operand.hbm [shape: bf16[32,128], index: 1, kind: input, shape index: {}]   ;;  %s1850_s2 = inlined_call_operand.hbm [shape: bf16[32,128], index: 2, kind: input, shape index: {}]   ;;  %s1851_s3 = inlined_call_operand.vmem [shape: f32[1,128], index: 3, kind: input, shape index: {}]   ;;  %s1852_s4 = inlined_call_operand.hbm [shape: bf16[16,32], index: 4, kind: input, shape index: {}]   ;;  %s1853_s5 = inlined_call_operand.hbm [shape: bf16[16,32], index: 5, kind: input, shape index: {}]   ;;  %s1854_s6 = inlined_call_operand.vmem [shape: f32[1,32], index: 6, kind: input, shape index: {}]   ;;  %s1855_s7 = inlined_call_operand.vmem [shape: bf16[32,128], index: 7, kind: input, shape index: {}]   ;;  %s1856_s8 = inlined_call_operand.vmem [shape: f32[1,128], index: 8, kind: input, shape index: {}]   ;;  %s1857_s9 = inlined_call_operand.vmem [shape: s32[8,1], index: 9, kind: input, shape index: {}]   ;;  %s1858_s10 = inlined_call_operand.hbm [shape: f32[8,128], index: 10, kind: output, shape index: {0}]   ;;  %s1859_s11 = inlined_call_operand.hbm [shape: f32[1,1], index: 11, kind: output, shape index: {1}]  }
   0x1   :  { %18 = vsyncpa [#allocation9], 0 }
   0x2   :  { %19 = vsyncpa [#allocation12], 0 }
   0x3   :  { %20 = vsyncpa [#allocation7], 0 }
   0x4   :  { %21 = vsyncpa [#allocation16], 0  ;;  %s1532_s17 = smov [#allocation8]  }
   0x5   :  { %s37_s18 = sshll.u32 %s1532_s17, 4  ;;  %s38_s18 = int_to_ptr.vmem [resolvable:$true] %s37_s18 }
   0x6   :  { %s1390_s19 = scalar_lea.vmem %s38_s18, 256  ;;  %p1395_p1 = scmp.lt.s32.totalorder %s38_s18, %s38_s18 }
   0x7   :  { %p1391_p0 = scmp.ne.s32.totalorder %s38_s18, %s1390_s19  ;;  %p1396_p2 = scmp.lt.s32.totalorder %s1390_s19, %s1390_s19 }
   0x9   :  { %p1397_p3 = por %p1396_p2, %p1395_p1 }
   0xb   :  { %p1398_p4 = pnand %p1397_p3, %p1391_p0 }
   0xd   :  { %1401 = shalt.err (!%p1398_p4)
}
   0xe   :  { %s1533_s20 = smov 64   ;;  %s1534_s21 = smov 4  }
   0xf   :  { %43 = dma.hbm_to_vmem [thread:$0]  %s1849_s1, 256, %s38_s18, [#allocation9], %s1533_s20, %s1533_s20, %s1534_s21  }
  0x10   :  { %s1535_s24 = smov [#allocation11]   ;;  %s1536_s26 = smov [#allocation5]  }
  0x11   :  { %s63_s25 = sshll.u32 %s1535_s24, 4  ;;  %s28_s27 = sshll.u32 %s1536_s26, 4  ;;  %s64_s25 = int_to_ptr.vmem [resolvable:$true] %s63_s25  ;;  %s29_s27 = int_to_ptr.vmem [resolvable:$true] %s28_s27 }
  0x12   :  { %s1410_s28 = scalar_lea.vmem %s64_s25, 128  ;;  %p1415_p6 = scmp.lt.s32.totalorder %s64_s25, %s64_s25 }
  0x13   :  { %p1411_p5 = scmp.ne.s32.totalorder %s64_s25, %s1410_s28  ;;  %p1416_p7 = scmp.lt.s32.totalorder %s1410_s28, %s1410_s28 }
  0x15   :  { %p1417_p8 = por %p1416_p7, %p1415_p6 }
  0x17   :  { %p1418_p9 = pnand %p1417_p8, %p1411_p5 }
  0x19   :  { %1421 = shalt.err (!%p1418_p9)
}
  0x1a   :  { %69 = dma.hbm_to_vmem [thread:$0]  %s1852_s4, 128, %s64_s25, [#allocation12], %s1533_s20, %s1533_s20, %s1534_s21  }
  0x1b   :  { %s1430_s1 = scalar_lea.vmem %s29_s27, 128  ;;  %p1435_p11 = scmp.lt.s32.totalorder %s29_s27, %s29_s27 }
  0x1c   :  { %p1431_p10 = scmp.ne.s32.totalorder %s29_s27, %s1430_s1  ;;  %p1436_p12 = scmp.lt.s32.totalorder %s1430_s1, %s1430_s1 }
  0x1e   :  { %p1437_p13 = por %p1436_p12, %p1435_p11 }
  0x20   :  { %p1438_p0 = pnand %p1437_p13, %p1431_p10 }
  0x22   :  { %1441 = shalt.err (!%p1438_p0)
}
  0x23   :  { %31 = dma.hbm_to_vmem [thread:$0]  %s1848_s0, 128, %s29_s27, [#allocation6]  }
  0x24   :  { %s1537_s14 = smov [#allocation10]   ;;  %s1538_s16 = smov [#allocation13]  }
  0x25   :  { %s49_s15 = sshll.u32 %s1537_s14, 4  ;;  %s75_s17 = sshll.u32 %s1538_s16, 4  ;;  %s50_s15 = int_to_ptr.vmem [resolvable:$true] %s49_s15  ;;  %s76_s17 = int_to_ptr.vmem [resolvable:$true] %s75_s17 }
  0x26   :  { %s1450_s18 = scalar_lea.vmem %s50_s15, 256  ;;  %p1455_p2 = scmp.lt.s32.totalorder %s50_s15, %s50_s15 }
  0x27   :  { %p1451_p1 = scmp.ne.s32.totalorder %s50_s15, %s1450_s18  ;;  %p1456_p3 = scmp.lt.s32.totalorder %s1450_s18, %s1450_s18 }
  0x29   :  { %p1457_p4 = por %p1456_p3, %p1455_p2 }
  0x2b   :  { %p1458_p5 = pnand %p1457_p4, %p1451_p1 }
  0x2d   :  { %1461 = shalt.err (!%p1458_p5)
}
  0x2e   :  { %55 = dma.hbm_to_vmem [thread:$0]  %s1850_s2, 256, %s50_s15, [#allocation9], %s1533_s20, %s1533_s20, %s1534_s21  }
  0x2f   :  { %s1470_s0 = scalar_lea.vmem %s76_s17, 128  ;;  %p1475_p7 = scmp.lt.s32.totalorder %s76_s17, %s76_s17 }
  0x30   :  { %p1471_p6 = scmp.ne.s32.totalorder %s76_s17, %s1470_s0  ;;  %p1476_p8 = scmp.lt.s32.totalorder %s1470_s0, %s1470_s0 }
  0x32   :  { %p1477_p9 = por %p1476_p8, %p1475_p7 }
  0x34   :  { %p1478_p10 = pnand %p1477_p9, %p1471_p6 }
  0x36   :  { %1481 = shalt.err (!%p1478_p10)
}
  0x37   :  { %81 = dma.hbm_to_vmem [thread:$0]  %s1853_s5, 128, %s76_s17, [#allocation12], %s1533_s20, %s1533_s20, %s1534_s21  }
  0x38   :  { %1522 = dma.done.wait [#allocation6], 128  }
  0x39   :  { %1523 = vsyncadd [#allocation6], 4294967168 }
  0x3a   :  { %1524 = dma.done.wait [#allocation9], 512  }
  0x3b   :  { %1525 = vsyncadd [#allocation9], 4294966784 }
  0x3c   :  { %1526 = dma.done.wait [#allocation12], 256  }
  0x3d   :  { %1527 = vsyncadd [#allocation12], 4294967040  ;;  %v1539_v0 = vmov 0.0   ;;  %vm1540_vm0 = vmmov 0   ;;  %v1541_v1 = vmov 0   ;;  %v1302_v2 = vld [vmem:[#allocation8 + $0x8] sm:$0xff]   ;;  %v180_v8 = vlaneseq }
  0x3e   :  { %1195 = vmatprep.subr.bf16.mxu0 %v1539_v0  ;;  %1203 = vmatprep.subr.bf16.mxu1 %v1539_v0  ;;  %v1303_v3 = vld [vmem:[#allocation8] sm:$0xff]   ;;  %v1639_v4 = vld [vmem:[#allocation10 + $0x8] sm:$0xff]   ;;  %vm131_vm1 = vcmask 261120   ;;  %v1643_v6 = vld [vmem:[#allocation10] sm:$0xff]   ;;  %vm282_vm3 = vcmask 122880   ;;  %s1543_s21 = smov 16  }
  0x3f   :  { %1199 = vmatprep.mubr.msk.bf16.mxu0 %vm1540_vm0, %v1539_v0  ;;  %1207 = vmatprep.mubr.msk.bf16.mxu1 %vm1540_vm0, %v1539_v0  ;;  %v106_v5 = vld [vmem:[#allocation5] sm:$0xff]  ;;  %v1130_v9 = vld [vmem:[%s1851_s3] ss:$0 sm:$0xff]  ;;  %v1665_v11 = vand.u32 127, %v180_v8  ;;  %s1542_s3 = smov 32   ;;  %vm890_vm4 = vcmask 130048  }
  0x40   :  { %1301 = vset.pattern.permute.xlu0 %v1541_v1  ;;  %1196 = vmatpush3.bf16.msra.mxu0 %v1302_v2  ;;  %v107_v7 = vpack.c.bf16 %v106_v5, %v106_v5 }
  0x41   :  { %1197 = vmatprep.subr.bf16.mxu0 %v1539_v0  ;;  %1204 = vmatpush3.bf16.msra.mxu1 %v1639_v4  ;;  %v186_v16 = vand.u32 31, %v1665_v11 }
  0x42   :  { %1205 = vmatprep.subr.bf16.mxu1 %v1539_v0 }
  0x43   :  { %vm1668_vm2 = vcmp.lt.s32.totalorder %v186_v16, 16 }
  0x44   :  { %1198 = vmatpush3.bf16.msra.mxu0 %v1303_v3 }
  0x45   :  { %1211 = vmatprep.subr.bf16.mxu0 %v1539_v0  ;;  %1206 = vmatpush3.bf16.msra.mxu1 %v1643_v6 }
  0x46   :  { %1219 = vmatprep.subr.bf16.mxu1 %v1539_v0 }
  0x47   :  { %1200 = vmatmul.mubr.msk.bf16.vlgmr.msra.gmra.mxu0 %vm131_vm1, %v107_v7 }
  0x48   :  { %1212 = vmatpush3.bf16.msra.mxu0 %v1639_v4  ;;  %1215 = vmatprep.mubr.msk.bf16.mxu0 %vm1540_vm0, %v1539_v0 }
  0x49   :  { %1208 = vmatmul.mubr.bf16.vlgmr.msra.gmra.mxu1 %v1541_v1  ;;  %1213 = vmatprep.subr.bf16.mxu0 %v1539_v0 }
  0x4a   :  { %1220 = vmatpush3.bf16.msra.mxu1 %v1639_v4  ;;  %1223 = vmatprep.mubr.msk.bf16.mxu1 %vm1540_vm0, %v1539_v0 }
  0x4b   :  { %1221 = vmatprep.subr.bf16.mxu1 %v1539_v0 }
  0x4c   :  { %1214 = vmatpush3.bf16.msra.mxu0 %v1643_v6 }
  0x4d   :  { %1227 = vmatprep.subr.bf16.mxu0 %v1539_v0 }
  0x4e   :  { %1222 = vmatpush3.bf16.msra.mxu1 %v1643_v6 }
  0x4f   :  { %1235 = vmatprep.subr.bf16.mxu1 %v1539_v0 }
 0x107   :  { %v169_v10 = vpop.f32.mrf.mxu0 }
 0x108   :  { %v170_v12 = vadd.f32 %v1130_v9, %v169_v10 }
 0x109   :  { %v1201_v13 = vpop.f32.mrf.mxu0  ;;  %v247_v14 = vpop.f32.mrf.mxu1 }
 0x10a   :  { %175 = vst [vmem:[#allocation2] sm:$0xff] %v170_v12 }
 0x10b   :  { %v172_v15 = vpop.f32.mrf.mxu0  ;;  %v1209_v17 = vpop.f32.mrf.mxu1 }
 0x10d   :  { %v1202_v18 = vpop.f32.mrf.mxu0  ;;  %v250_v19 = vpop.f32.mrf.mxu1 }
 0x10f   :  { %v1210_v21 = vpop.f32.mrf.mxu1 }
 0x111   :  { %v195_v22 = vld [vmem:[#allocation2] sm:$0x1]  ;;  %v196_v23 = vld [vmem:[#allocation2 + $0x7] sm:$0x1]  ;;  %v288_v41 = vld [vmem:[#allocation2 + $0x1] sm:$0x1] }
 0x112   :  { %v197_v24 = vsel %vm1668_vm2, %v195_v22, %v196_v23  ;;  %v289_v42 = vld [vmem:[#allocation2 + $0x6] sm:$0x1]  ;;  %v372_v1 = vld [vmem:[#allocation2 + $0x2] sm:$0x1]  ;;  %v373_v2 = vld [vmem:[#allocation2 + $0x5] sm:$0x1] }
 0x113   :  { %v253_v25 = vadd.f32 %v247_v14, %v197_v24  ;;  %v290_v43 = vsel %vm1668_vm2, %v288_v41, %v289_v42  ;;  %v374_v3 = vsel %vm1668_vm2, %v372_v1, %v373_v2 }
 0x115   :  { %1310 = vtanh.f32 %v253_v25  ;;  %v1136_v27 = vmul.f32 -1.442695, %v253_v25 }
 0x117   :  { %1312 = vpow2.f32 %v1136_v27 }
 0x122   :  { %v1311_v26 = vpop.eup %1310 }
 0x123   :  { %263 = vrot.lane.b32.xlu0 %v1311_v26, %s1533_s20 }
 0x124   :  { %v1313_v28 = vpop.eup %1312 }
 0x125   :  { %v257_v29 = vadd.f32 1.0, %v1313_v28  ;;  %v456_v28 = vld [vmem:[#allocation2 + $0x3] sm:$0x1] }
 0x127   :  { %1314 = vrcp.f32 %v257_v29  ;;  %v457_v29 = vld [vmem:[#allocation2 + $0x4] sm:$0x1] }
 0x134   :  { %v1315_v30 = vpop.eup %1314 }
 0x135   :  { %v261_v33 = vmul.f32 0.0, %v1315_v30 }
 0x195   :  { %v264_v31 = vpop.permute.xlu0 %263 }
 0x196   :  { %v266_v32 = vmul.f32 %v1315_v30, %v264_v31 }
 0x198   :  { %268 = vrot.lane.b32.xlu0 %v266_v32, %s1542_s3 }
 0x20a   :  { %v269_v34 = vpop.permute.xlu0 %268 }
 0x20b   :  { %v271_v35 = vadd.f32 %v269_v34, %v261_v33 }
 0x20d   :  { %1316 = vtanh.f32 %v271_v35 }
 0x21a   :  { %v1317_v36 = vpop.eup %1316 }
 0x21b   :  { %274 = vrot.lane.b32.xlu1 %v1317_v36, %s1533_s20 }
 0x28d   :  { %v275_v37 = vpop.permute.xlu1 %274 }
 0x28e   :  { %v1677_v38 = vmul.f32 %v1315_v30, %v275_v37  ;;  %v458_v30 = vsel %vm1668_vm2, %v456_v28, %v457_v29 }
 0x290   :  { %v291_v39 = vpack.c.bf16 %v1677_v38, %v1677_v38 }
 0x292   :  { %293 = vrot.lane.b32.xlu1 %v291_v39, %s1542_s3 }
 0x304   :  { %v294_v40 = vpop.permute.xlu1 %293 }
 0x305   :  { %1216 = vmatmul.mubr.msk.bf16.vlgmr.msra.gmra.mxu0 %vm131_vm1, %v294_v40 }
 0x306   :  { %1228 = vmatpush3.bf16.msra.mxu0 %v1639_v4  ;;  %1231 = vmatprep.mubr.msk.bf16.mxu0 %vm1540_vm0, %v1539_v0 }
 0x307   :  { %1229 = vmatprep.subr.bf16.mxu0 %v1539_v0 }
 0x30a   :  { %1230 = vmatpush3.bf16.msra.mxu0 %v1643_v6 }
 0x30b   :  { %1243 = vmatprep.subr.bf16.mxu0 %v1539_v0 }
 0x3c5   :  { %v332_v44 = vpop.f32.mrf.mxu0 }
 0x3c6   :  { %v338_v45 = vadd.f32 %v332_v44, %v290_v43 }
 0x3c7   :  { %v1217_v46 = vpop.f32.mrf.mxu0 }
 0x3c8   :  { %1318 = vtanh.f32 %v338_v45  ;;  %v1138_v50 = vmul.f32 -1.442695, %v338_v45 }
 0x3c9   :  { %v335_v47 = vpop.f32.mrf.mxu0 }
 0x3ca   :  { %1320 = vpow2.f32 %v1138_v50 }
 0x3cb   :  { %v1218_v48 = vpop.f32.mrf.mxu0 }
 0x3d5   :  { %v1319_v49 = vpop.eup %1318 }
 0x3d6   :  { %348 = vrot.lane.b32.xlu0 %v1319_v49, %s1533_s20 }
 0x3d7   :  { %v1321_v51 = vpop.eup %1320 }
 0x3d8   :  { %v342_v52 = vadd.f32 1.0, %v1321_v51 }
 0x3da   :  { %1322 = vrcp.f32 %v342_v52  ;;  %v540_v52 = vld [vmem:[#allocation2 + $0x4] sm:$0x1] }
 0x3e7   :  { %v1323_v53 = vpop.eup %1322 }
 0x3e8   :  { %v346_v56 = vmul.f32 %v1323_v53, %v271_v35 }
 0x448   :  { %v349_v54 = vpop.permute.xlu0 %348 }
 0x449   :  { %v351_v55 = vmul.f32 %v1323_v53, %v349_v54 }
 0x44b   :  { %353 = vrot.lane.b32.xlu1 %v351_v55, %s1542_s3 }
 0x4bd   :  { %v354_v57 = vpop.permute.xlu1 %353 }
 0x4be   :  { %v356_v58 = vadd.f32 %v354_v57, %v346_v56 }
 0x4c0   :  { %1324 = vtanh.f32 %v356_v58 }
 0x4cd   :  { %v1325_v59 = vpop.eup %1324 }
 0x4ce   :  { %359 = vrot.lane.b32.xlu0 %v1325_v59, %s1533_s20 }
 0x540   :  { %v360_v60 = vpop.permute.xlu0 %359 }
 0x541   :  { %v1694_v61 = vmul.f32 %v1323_v53, %v360_v60  ;;  %v541_v53 = vld [vmem:[#allocation2 + $0x3] sm:$0x1] }
 0x542   :  { %v542_v54 = vsel %vm1668_vm2, %v540_v52, %v541_v53 }
 0x543   :  { %v375_v62 = vpack.c.bf16 %v1694_v61, %v1694_v61 }
 0x545   :  { %377 = vrot.lane.b32.xlu1 %v375_v62, %s1542_s3 }
 0x5b7   :  { %v378_v63 = vpop.permute.xlu1 %377 }
 0x5b8   :  { %1224 = vmatmul.mubr.msk.bf16.vlgmr.msra.gmra.mxu1 %vm131_vm1, %v378_v63 }
 0x5b9   :  { %1236 = vmatpush3.bf16.msra.mxu1 %v1639_v4  ;;  %1239 = vmatprep.mubr.msk.bf16.mxu1 %vm1540_vm0, %v1539_v0 }
 0x5ba   :  { %1237 = vmatprep.subr.bf16.mxu1 %v1539_v0 }
 0x5bd   :  { %1238 = vmatpush3.bf16.msra.mxu1 %v1643_v6 }
 0x5be   :  { %1251 = vmatprep.subr.bf16.mxu1 %v1539_v0 }
 0x678   :  { %v416_v5 = vpop.f32.mrf.mxu1 }
 0x679   :  { %v422_v7 = vadd.f32 %v416_v5, %v374_v3 }
 0x67a   :  { %v1225_v8 = vpop.f32.mrf.mxu1 }
 0x67b   :  { %1326 = vtanh.f32 %v422_v7  ;;  %v1140_v13 = vmul.f32 -1.442695, %v422_v7 }
 0x67c   :  { %v419_v9 = vpop.f32.mrf.mxu1 }
 0x67d   :  { %1328 = vpow2.f32 %v1140_v13 }
 0x67e   :  { %v1226_v10 = vpop.f32.mrf.mxu1 }
 0x688   :  { %v1327_v12 = vpop.eup %1326 }
 0x689   :  { %432 = vrot.lane.b32.xlu0 %v1327_v12, %s1533_s20 }
 0x68a   :  { %v1329_v14 = vpop.eup %1328 }
 0x68b   :  { %v426_v15 = vadd.f32 1.0, %v1329_v14 }
 0x68d   :  { %1330 = vrcp.f32 %v426_v15 }
 0x69a   :  { %v1331_v16 = vpop.eup %1330 }
 0x69b   :  { %v430_v19 = vmul.f32 %v1331_v16, %v356_v58 }
 0x6fb   :  { %v433_v17 = vpop.permute.xlu0 %432 }
 0x6fc   :  { %v435_v18 = vmul.f32 %v1331_v16, %v433_v17  ;;  %v625_v17 = vld [vmem:[#allocation2 + $0x2] sm:$0x1] }
 0x6fe   :  { %437 = vrot.lane.b32.xlu1 %v435_v18, %s1542_s3 }
 0x770   :  { %v438_v21 = vpop.permute.xlu1 %437 }
 0x771   :  { %v440_v22 = vadd.f32 %v438_v21, %v430_v19 }
 0x773   :  { %1332 = vtanh.f32 %v440_v22 }
 0x780   :  { %v1333_v23 = vpop.eup %1332 }
 0x781   :  { %443 = vrot.lane.b32.xlu0 %v1333_v23, %s1533_s20 }
 0x7f3   :  { %v444_v24 = vpop.permute.xlu0 %443 }
 0x7f4   :  { %v1711_v25 = vmul.f32 %v1331_v16, %v444_v24  ;;  %v624_v16 = vld [vmem:[#allocation2 + $0x5] sm:$0x1] }
 0x7f5   :  { %v626_v18 = vsel %vm1668_vm2, %v624_v16, %v625_v17 }
 0x7f6   :  { %v459_v26 = vpack.c.bf16 %v1711_v25, %v1711_v25 }
 0x7f8   :  { %461 = vrot.lane.b32.xlu1 %v459_v26, %s1542_s3 }
 0x86a   :  { %v462_v27 = vpop.permute.xlu1 %461 }
 0x86b   :  { %1232 = vmatmul.mubr.msk.bf16.vlgmr.msra.gmra.mxu0 %vm131_vm1, %v462_v27 }
 0x86c   :  { %1244 = vmatpush3.bf16.msra.mxu0 %v1639_v4  ;;  %1247 = vmatprep.mubr.msk.bf16.mxu0 %vm1540_vm0, %v1539_v0 }
 0x86d   :  { %1245 = vmatprep.subr.bf16.mxu0 %v1539_v0 }
 0x870   :  { %1246 = vmatpush3.bf16.msra.mxu0 %v1643_v6 }
 0x871   :  { %1259 = vmatprep.subr.bf16.mxu0 %v1539_v0 }
 0x92b   :  { %v500_v31 = vpop.f32.mrf.mxu0 }
 0x92c   :  { %v506_v32 = vadd.f32 %v500_v31, %v458_v30 }
 0x92d   :  { %v1233_v33 = vpop.f32.mrf.mxu0 }
 0x92e   :  { %1334 = vtanh.f32 %v506_v32  ;;  %v1142_v37 = vmul.f32 -1.442695, %v506_v32 }
 0x92f   :  { %v503_v34 = vpop.f32.mrf.mxu0 }
 0x930   :  { %1336 = vpow2.f32 %v1142_v37 }
 0x931   :  { %v1234_v35 = vpop.f32.mrf.mxu0 }
 0x93b   :  { %v1335_v36 = vpop.eup %1334 }
 0x93c   :  { %516 = vrot.lane.b32.xlu0 %v1335_v36, %s1533_s20 }
 0x93d   :  { %v1337_v39 = vpop.eup %1336 }
 0x93e   :  { %v510_v40 = vadd.f32 1.0, %v1337_v39 }
 0x940   :  { %1338 = vrcp.f32 %v510_v40  ;;  %v708_v40 = vld [vmem:[#allocation2 + $0x6] sm:$0x1] }
 0x94d   :  { %v1339_v41 = vpop.eup %1338 }
 0x94e   :  { %v514_v44 = vmul.f32 %v1339_v41, %v440_v22 }
 0x9ae   :  { %v517_v42 = vpop.permute.xlu0 %516 }
 0x9af   :  { %v519_v43 = vmul.f32 %v1339_v41, %v517_v42 }
 0x9b1   :  { %521 = vrot.lane.b32.xlu1 %v519_v43, %s1542_s3 }
 0xa23   :  { %v522_v45 = vpop.permute.xlu1 %521 }
 0xa24   :  { %v524_v46 = vadd.f32 %v522_v45, %v514_v44 }
 0xa26   :  { %1340 = vtanh.f32 %v524_v46 }
 0xa33   :  { %v1341_v47 = vpop.eup %1340 }
 0xa34   :  { %527 = vrot.lane.b32.xlu0 %v1341_v47, %s1533_s20 }
 0xaa6   :  { %v528_v48 = vpop.permute.xlu0 %527 }
 0xaa7   :  { %v1728_v49 = vmul.f32 %v1339_v41, %v528_v48  ;;  %v709_v41 = vld [vmem:[#allocation2 + $0x1] sm:$0x1] }
 0xaa8   :  { %v710_v42 = vsel %vm1668_vm2, %v708_v40, %v709_v41 }
 0xaa9   :  { %v543_v50 = vpack.c.bf16 %v1728_v49, %v1728_v49 }
 0xaab   :  { %545 = vrot.lane.b32.xlu1 %v543_v50, %s1542_s3 }
 0xb1d   :  { %v546_v51 = vpop.permute.xlu1 %545 }
 0xb1e   :  { %1240 = vmatmul.mubr.msk.bf16.vlgmr.msra.gmra.mxu1 %vm131_vm1, %v546_v51 }
 0xb1f   :  { %1252 = vmatpush3.bf16.msra.mxu1 %v1639_v4  ;;  %1255 = vmatprep.mubr.msk.bf16.mxu1 %vm1540_vm0, %v1539_v0 }
 0xb20   :  { %1253 = vmatprep.subr.bf16.mxu1 %v1539_v0 }
 0xb23   :  { %1254 = vmatpush3.bf16.msra.mxu1 %v1643_v6 }
 0xb24   :  { %1267 = vmatprep.subr.bf16.mxu1 %v1539_v0 }
 0xbde   :  { %v584_v55 = vpop.f32.mrf.mxu1 }
 0xbdf   :  { %v590_v56 = vadd.f32 %v584_v55, %v542_v54 }
 0xbe0   :  { %v1241_v57 = vpop.f32.mrf.mxu1 }
 0xbe1   :  { %1342 = vtanh.f32 %v590_v56  ;;  %v1144_v62 = vmul.f32 -1.442695, %v590_v56 }
 0xbe2   :  { %v587_v58 = vpop.f32.mrf.mxu1 }
 0xbe3   :  { %1344 = vpow2.f32 %v1144_v62 }
 0xbe4   :  { %v1242_v59 = vpop.f32.mrf.mxu1 }
 0xbee   :  { %v1343_v60 = vpop.eup %1342 }
 0xbef   :  { %600 = vrot.lane.b32.xlu0 %v1343_v60, %s1533_s20 }
 0xbf0   :  { %v1345_v63 = vpop.eup %1344 }
 0xbf1   :  { %v594_v1 = vadd.f32 1.0, %v1345_v63 }
 0xbf3   :  { %1346 = vrcp.f32 %v594_v1 }
 0xc00   :  { %v1347_v2 = vpop.eup %1346 }
 0xc01   :  { %v598_v7 = vmul.f32 %v1347_v2, %v524_v46 }
 0xc61   :  { %v601_v3 = vpop.permute.xlu0 %600 }
 0xc62   :  { %v603_v5 = vmul.f32 %v1347_v2, %v601_v3  ;;  %v793_v3 = vld [vmem:[#allocation2] sm:$0x1] }
 0xc64   :  { %605 = vrot.lane.b32.xlu1 %v603_v5, %s1542_s3 }
 0xcd6   :  { %v606_v8 = vpop.permute.xlu1 %605 }
 0xcd7   :  { %v608_v9 = vadd.f32 %v606_v8, %v598_v7 }
 0xcd9   :  { %1348 = vtanh.f32 %v608_v9 }
 0xce6   :  { %v1349_v10 = vpop.eup %1348 }
 0xce7   :  { %611 = vrot.lane.b32.xlu0 %v1349_v10, %s1533_s20 }
 0xd59   :  { %v612_v12 = vpop.permute.xlu0 %611 }
 0xd5a   :  { %v1745_v13 = vmul.f32 %v1347_v2, %v612_v12  ;;  %v792_v2 = vld [vmem:[#allocation2 + $0x7] sm:$0x1] }
 0xd5b   :  { %v794_v5 = vsel %vm1668_vm2, %v792_v2, %v793_v3 }
 0xd5c   :  { %v627_v14 = vpack.c.bf16 %v1745_v13, %v1745_v13 }
 0xd5e   :  { %629 = vrot.lane.b32.xlu1 %v627_v14, %s1542_s3 }
 0xdd0   :  { %v630_v15 = vpop.permute.xlu1 %629 }
 0xdd1   :  { %1248 = vmatmul.mubr.msk.bf16.vlgmr.msra.gmra.mxu0 %vm131_vm1, %v630_v15 }
 0xdd2   :  { %1260 = vmatpush3.bf16.msra.mxu0 %v1639_v4  ;;  %1263 = vmatprep.mubr.msk.bf16.mxu0 %vm1540_vm0, %v1539_v0 }
 0xdd3   :  { %1261 = vmatprep.subr.bf16.mxu0 %v1539_v0 }
 0xdd6   :  { %1262 = vmatpush3.bf16.msra.mxu0 %v1643_v6 }
 0xdd7   :  { %1273 = vmatprep.subr.bf16.mxu0 %v1539_v0 }
 0xe91   :  { %v668_v19 = vpop.f32.mrf.mxu0 }
 0xe92   :  { %v674_v21 = vadd.f32 %v668_v19, %v626_v18 }
 0xe93   :  { %v1249_v22 = vpop.f32.mrf.mxu0 }
 0xe94   :  { %1350 = vtanh.f32 %v674_v21  ;;  %v1146_v26 = vmul.f32 -1.442695, %v674_v21 }
 0xe95   :  { %v671_v23 = vpop.f32.mrf.mxu0 }
 0xe96   :  { %1352 = vpow2.f32 %v1146_v26 }
 0xe97   :  { %v1250_v4 = vpop.f32.mrf.mxu0 }
 0xea1   :  { %v1351_v24 = vpop.eup %1350 }
 0xea2   :  { %684 = vrot.lane.b32.xlu0 %v1351_v24, %s1533_s20 }
 0xea3   :  { %v1353_v27 = vpop.eup %1352 }
 0xea4   :  { %v678_v6 = vadd.f32 1.0, %v1353_v27 }
 0xea6   :  { %1354 = vrcp.f32 %v678_v6 }
 0xeb3   :  { %v1355_v28 = vpop.eup %1354 }
 0xeb4   :  { %v682_v31 = vmul.f32 %v1355_v28, %v608_v9 }
 0xf14   :  { %v685_v29 = vpop.permute.xlu0 %684 }
 0xf15   :  { %v687_v30 = vmul.f32 %v1355_v28, %v685_v29 }
 0xf17   :  { %689 = vrot.lane.b32.xlu1 %v687_v30, %s1542_s3 }
 0xf89   :  { %v690_v32 = vpop.permute.xlu1 %689 }
 0xf8a   :  { %v692_v33 = vadd.f32 %v690_v32, %v682_v31  ;;  %v1306_v31 = vld [vmem:[#allocation13] sm:$0xff]   ;;  %v1307_v32 = vld [vmem:[#allocation11] sm:$0xff]  }
 0xf8c   :  { %1356 = vtanh.f32 %v692_v33 }
 0xf99   :  { %v1357_v34 = vpop.eup %1356 }
 0xf9a   :  { %695 = vrot.lane.b32.xlu0 %v1357_v34, %s1533_s20 }
0x100c   :  { %v696_v35 = vpop.permute.xlu0 %695 }
0x100d   :  { %v1762_v36 = vmul.f32 %v1355_v28, %v696_v35 }
0x100f   :  { %v711_v37 = vpack.c.bf16 %v1762_v36, %v1762_v36 }
0x1011   :  { %713 = vrot.lane.b32.xlu1 %v711_v37, %s1542_s3 }
0x1083   :  { %v714_v39 = vpop.permute.xlu1 %713 }
0x1084   :  { %1256 = vmatmul.mubr.msk.bf16.vlgmr.msra.gmra.mxu1 %vm131_vm1, %v714_v39 }
0x1085   :  { %1269 = vmatprep.mubr.msk.bf16.mxu1 %vm1540_vm0, %v1539_v0  ;;  %1268 = vmatpush3.bf16.msra.mxu1 %v1306_v31 }
0x1086   :  { %1279 = vmatprep.subr.bf16.mxu1 %v1539_v0 }
0x1144   :  { %v752_v43 = vpop.f32.mrf.mxu1 }
0x1145   :  { %v758_v44 = vadd.f32 %v752_v43, %v710_v42 }
0x1146   :  { %v1257_v45 = vpop.f32.mrf.mxu1 }
0x1147   :  { %1358 = vtanh.f32 %v758_v44  ;;  %v1148_v50 = vmul.f32 -1.442695, %v758_v44  ;;  %v1308_v44 = vld [vmem:[%s1855_s7 + $0x8] sm:$0xff]   ;;  %v1309_v45 = vld [vmem:[%s1855_s7] sm:$0xff]  }
0x1148   :  { %v755_v46 = vpop.f32.mrf.mxu1 }
0x1149   :  { %1360 = vpow2.f32 %v1148_v50 }
0x114a   :  { %v1258_v47 = vpop.f32.mrf.mxu1 }
0x1154   :  { %v1359_v48 = vpop.eup %1358 }
0x1155   :  { %768 = vrot.lane.b32.xlu0 %v1359_v48, %s1533_s20  ;;  %v1155_v48 = vld [vmem:[%s1854_s6] ss:$0 sm:$0xff] }
0x1156   :  { %v1361_v51 = vpop.eup %1360 }
0x1157   :  { %v762_v52 = vadd.f32 1.0, %v1361_v51 }
0x1159   :  { %1362 = vrcp.f32 %v762_v52 }
0x1166   :  { %v1363_v53 = vpop.eup %1362 }
0x1167   :  { %v766_v56 = vmul.f32 %v1363_v53, %v692_v33 }
0x11c7   :  { %v769_v54 = vpop.permute.xlu0 %768 }
0x11c8   :  { %v771_v55 = vmul.f32 %v1363_v53, %v769_v54 }
0x11ca   :  { %773 = vrot.lane.b32.xlu1 %v771_v55, %s1542_s3 }
0x123c   :  { %v774_v57 = vpop.permute.xlu1 %773 }
0x123d   :  { %v776_v58 = vadd.f32 %v774_v57, %v766_v56 }
0x123f   :  { %1364 = vtanh.f32 %v776_v58 }
0x124c   :  { %v1365_v59 = vpop.eup %1364 }
0x124d   :  { %779 = vrot.lane.b32.xlu0 %v1365_v59, %s1533_s20 }
0x12bf   :  { %v780_v60 = vpop.permute.xlu0 %779 }
0x12c0   :  { %v782_v62 = vmul.f32 %v1363_v53, %v780_v60 }
0x12c2   :  { %v795_v63 = vpack.c.bf16 %v782_v62, %v782_v62 }
0x12c4   :  { %797 = vrot.lane.b32.xlu1 %v795_v63, %s1542_s3 }
0x1336   :  { %v798_v1 = vpop.permute.xlu1 %797 }
0x1337   :  { %1264 = vmatmul.mubr.msk.bf16.vlgmr.msra.gmra.mxu0 %vm131_vm1, %v798_v1 }
0x1338   :  { %1275 = vmatprep.mubr.msk.bf16.mxu0 %vm1540_vm0, %v1539_v0  ;;  %1274 = vmatpush3.bf16.msra.mxu0 %v1307_v32 }
0x13f7   :  { %v836_v7 = vpop.f32.mrf.mxu0 }
0x13f8   :  { %v842_v8 = vadd.f32 %v836_v7, %v794_v5  ;;  %v1156_v5 = vld [vmem:[%s1856_s8] ss:$0 sm:$0xff]  ;;  %s1544_s8 = smov [#allocation14]  }
0x13f9   :  { %v1265_v9 = vpop.f32.mrf.mxu0  ;;  %s1105_s1 = sshll.u32 %s1544_s8, 4  ;;  %s1106_s1 = int_to_ptr.vmem [resolvable:$true] %s1105_s1 }
0x13fa   :  { %1366 = vtanh.f32 %v842_v8  ;;  %v1150_v15 = vmul.f32 -1.442695, %v842_v8  ;;  %s1482_s12 = scalar_lea.vmem %s1106_s1, 128  ;;  %p1487_p12 = scmp.lt.s32.totalorder %s1106_s1, %s1106_s1 }
0x13fb   :  { %v839_v10 = vpop.f32.mrf.mxu0  ;;  %p1483_p11 = scmp.ne.s32.totalorder %s1106_s1, %s1482_s12  ;;  %p1488_p13 = scmp.lt.s32.totalorder %s1482_s12, %s1482_s12 }
0x13fc   :  { %1368 = vpow2.f32 %v1150_v15 }
0x13fd   :  { %v1266_v12 = vpop.f32.mrf.mxu0  ;;  %p1489_p0 = por %p1488_p13, %p1487_p12 }
0x13ff   :  { %p1490_p1 = pnand %p1489_p0, %p1483_p11 }
0x1407   :  { %v1367_v14 = vpop.eup %1366 }
0x1408   :  { %852 = vrot.lane.b32.xlu0 %v1367_v14, %s1533_s20 }
0x1409   :  { %v1369_v16 = vpop.eup %1368 }
0x140a   :  { %v846_v17 = vadd.f32 1.0, %v1369_v16 }
0x140c   :  { %1370 = vrcp.f32 %v846_v17 }
0x1419   :  { %v1371_v18 = vpop.eup %1370 }
0x141a   :  { %v850_v20 = vmul.f32 %v1371_v18, %v776_v58 }
0x147a   :  { %v853_v19 = vpop.permute.xlu0 %852 }
0x147b   :  { %v855_v21 = vmul.f32 %v1371_v18, %v853_v19 }
0x147d   :  { %857 = vrot.lane.b32.xlu1 %v855_v21, %s1542_s3 }
0x1481   :  { %279 = vrot.lane.b32.xlu1 %v1677_v38, %s1542_s3 }
0x1485   :  { %364 = vrot.lane.b32.xlu1 %v1694_v61, %s1542_s3 }
0x1489   :  { %448 = vrot.lane.b32.xlu1 %v1711_v25, %s1542_s3 }
0x148d   :  { %532 = vrot.lane.b32.xlu1 %v1728_v49, %s1542_s3 }
0x1491   :  { %616 = vrot.lane.b32.xlu1 %v1745_v13, %s1542_s3 }
0x1495   :  { %700 = vrot.lane.b32.xlu1 %v1762_v36, %s1542_s3 }
0x1499   :  { %784 = vrot.lane.b32.xlu1 %v782_v62, %s1542_s3 }
0x14ef   :  { %v858_v22 = vpop.permute.xlu1 %857 }
0x14f0   :  { %v860_v23 = vadd.f32 %v858_v22, %v850_v20 }
0x14f2   :  { %1372 = vtanh.f32 %v860_v23 }
0x14f3   :  { %v280_v4 = vpop.permute.xlu1 %279 }
0x14f4   :  { %283 = vst.msk [vmem:[#allocation3] sm:$0x1] %vm282_vm3, %v280_v4 }
0x14f7   :  { %v365_v24 = vpop.permute.xlu1 %364 }
0x14f8   :  { %367 = vst.msk [vmem:[#allocation3 + $0x1] sm:$0x1] %vm282_vm3, %v365_v24 }
0x14fb   :  { %v449_v26 = vpop.permute.xlu1 %448 }
0x14fc   :  { %451 = vst.msk [vmem:[#allocation3 + $0x2] sm:$0x1] %vm282_vm3, %v449_v26 }
0x14ff   :  { %v1373_v27 = vpop.eup %1372  ;;  %v533_v6 = vpop.permute.xlu1 %532 }
0x1500   :  { %535 = vst.msk [vmem:[#allocation3 + $0x3] sm:$0x1] %vm282_vm3, %v533_v6  ;;  %863 = vrot.lane.b32.xlu0 %v1373_v27, %s1533_s20 }
0x1503   :  { %v617_v28 = vpop.permute.xlu1 %616 }
0x1504   :  { %619 = vst.msk [vmem:[#allocation3 + $0x4] sm:$0x1] %vm282_vm3, %v617_v28  ;;  %284 = vrot.lane.b32.xlu0 %v1677_v38, %s1543_s21 }
0x1507   :  { %v701_v29 = vpop.permute.xlu1 %700 }
0x1508   :  { %703 = vst.msk [vmem:[#allocation3 + $0x5] sm:$0x1] %vm282_vm3, %v701_v29  ;;  %368 = vrot.lane.b32.xlu0 %v1694_v61, %s1543_s21 }
0x150b   :  { %v785_v30 = vpop.permute.xlu1 %784 }
0x150c   :  { %787 = vst.msk [vmem:[#allocation3 + $0x6] sm:$0x1] %vm282_vm3, %v785_v30  ;;  %452 = vrot.lane.b32.xlu0 %v1711_v25, %s1543_s21 }
0x1510   :  { %536 = vrot.lane.b32.xlu0 %v1728_v49, %s1543_s21 }
0x1514   :  { %620 = vrot.lane.b32.xlu0 %v1745_v13, %s1543_s21 }
0x1518   :  { %704 = vrot.lane.b32.xlu0 %v1762_v36, %s1543_s21 }
0x151c   :  { %788 = vrot.lane.b32.xlu0 %v782_v62, %s1543_s21 }
0x1572   :  { %v864_v38 = vpop.permute.xlu0 %863 }
0x1573   :  { %v866_v61 = vmul.f32 %v1371_v18, %v864_v38  ;;  %v1078_v18 = vld [vmem:[%s1857_s9] sm:$0xff] }
0x1575   :  { %872 = vrot.lane.b32.xlu0 %v866_v61, %s1543_s21  ;;  %868 = vrot.lane.b32.xlu1 %v866_v61, %s1542_s3 }
0x1576   :  { %v285_v33 = vpop.permute.xlu0 %284 }
0x1577   :  { %287 = vst.msk [vmem:[#allocation4 + $0x7] sm:$0x1] %vm282_vm3, %v285_v33 }
0x157a   :  { %v369_v25 = vpop.permute.xlu0 %368 }
0x157b   :  { %371 = vst.msk [vmem:[#allocation4 + $0x6] sm:$0x1] %vm282_vm3, %v369_v25 }
0x157e   :  { %v453_v49 = vpop.permute.xlu0 %452 }
0x157f   :  { %455 = vst.msk [vmem:[#allocation4 + $0x5] sm:$0x1] %vm282_vm3, %v453_v49 }
0x1582   :  { %v537_v13 = vpop.permute.xlu0 %536 }
0x1583   :  { %539 = vst.msk [vmem:[#allocation4 + $0x4] sm:$0x1] %vm282_vm3, %v537_v13 }
0x1586   :  { %v621_v34 = vpop.permute.xlu0 %620 }
0x1587   :  { %623 = vst.msk [vmem:[#allocation4 + $0x3] sm:$0x1] %vm282_vm3, %v621_v34 }
0x158a   :  { %v705_v35 = vpop.permute.xlu0 %704 }
0x158b   :  { %707 = vst.msk [vmem:[#allocation4 + $0x2] sm:$0x1] %vm282_vm3, %v705_v35 }
0x158e   :  { %v789_v36 = vpop.permute.xlu0 %788 }
0x158f   :  { %791 = vst.msk [vmem:[#allocation4 + $0x1] sm:$0x1] %vm282_vm3, %v789_v36 }
0x15e7   :  { %v869_v37 = vpop.permute.xlu1 %868  ;;  %v873_v39 = vpop.permute.xlu0 %872 }
0x15e8   :  { %871 = vst.msk [vmem:[#allocation3 + $0x7] sm:$0x1] %vm282_vm3, %v869_v37  ;;  %875 = vst.msk [vmem:[#allocation4] sm:$0x1] %vm282_vm3, %v873_v39 }
0x15ef   :  { %v880_v40 = vld [vmem:[#allocation4] sm:$0xff]  ;;  %v876_v41 = vld [vmem:[#allocation3] sm:$0xff] }
0x15f0   :  { %v881_v42 = vpack.c.bf16 %v880_v40, %v880_v40  ;;  %v877_v43 = vpack.c.bf16 %v876_v41, %v876_v41 }
0x15f2   :  { %1270 = vmatmul.mubr.msk.bf16.vlgmr.msra.gmra.mxu1 %vm890_vm4, %v881_v42  ;;  %1276 = vmatmul.mubr.msk.bf16.vlgmr.msra.gmra.mxu0 %vm890_vm4, %v877_v43 }
0x15f3   :  { %1283 = vmatprep.mubr.msk.bf16.mxu1 %vm1540_vm0, %v1539_v0  ;;  %1280 = vmatpush3.bf16.msra.mxu1 %v1308_v44 }
0x15f4   :  { %1281 = vmatprep.subr.bf16.mxu1 %v1539_v0 }
0x15f7   :  { %1282 = vmatpush3.bf16.msra.mxu1 %v1309_v45 }
0x16b2   :  { %v928_v46 = vpop.f32.mrf.mxu1  ;;  %v977_v47 = vpop.f32.mrf.mxu0 }
0x16b3   :  { %v978_v50 = vadd.f32 %v977_v47, %v928_v46 }
0x16b4   :  { %v1271_v51 = vpop.f32.mrf.mxu1  ;;  %v1277_v52 = vpop.f32.mrf.mxu0 }
0x16b5   :  { %v990_v53 = vadd.f32 %v1155_v48, %v978_v50 }
0x16b6   :  { %v931_v54 = vpop.f32.mrf.mxu1  ;;  %v980_v55 = vpop.f32.mrf.mxu0 }
0x16b7   :  { %v993_v56 = vmul.f32 1.442695, %v990_v53  ;;  %v991_v57 = vmul.f32 0.5, %v990_v53  ;;  %vm997_vm5 = vcmp.gt.f32.partialorder %v990_v53, 0.0 }
0x16b8   :  { %v1272_v58 = vpop.f32.mrf.mxu1  ;;  %v1278_v59 = vpop.f32.mrf.mxu0 }
0x16b9   :  { %1374 = vpow2.f32 %v993_v56 }
0x16ba   :  { %1376 = vtanh.f32 %v991_v57 }
0x16c6   :  { %v1375_v60 = vpop.eup %1374 }
0x16c7   :  { %v995_v62 = vadd.f32 1.0, %v1375_v60  ;;  %v1377_v63 = vpop.eup %1376 }
0x16c9   :  { %v996_v1 = vmul.f32 %v1377_v63, %v995_v62 }
0x16cb   :  { %v998_v2 = vsel %vm997_vm5, %v990_v53, %v996_v1 }
0x16cc   :  { %v999_v3 = vpack.c.bf16 %v998_v2, %v998_v2 }
0x16ce   :  { %1284 = vmatmul.mubr.msk.bf16.vlgmr.msra.gmra.mxu1 %vm131_vm1, %v999_v3 }
0x178e   :  { %v1060_v7 = vpop.f32.mrf.mxu1 }
0x178f   :  { %v1061_v8 = vadd.f32 %v1156_v5, %v1060_v7 }
0x1790   :  { %v1285_v9 = vpop.f32.mrf.mxu1 }
0x1791   :  { %1066 = vst [vmem:[#allocation14] sm:$0xff] %v1061_v8  ;;  %1067 = vmax.xlane.f32.xlu1 %v1061_v8 }
0x1792   :  { %v1063_v10 = vpop.f32.mrf.mxu1 }
0x1794   :  { %v1286_v12 = vpop.f32.mrf.mxu1 }
0x181a   :  { %v1068_v14 = vpop.xlane.xlu1 %1067 }
0x181b   :  { %v1069_v15 = vsub.f32 %v1061_v8, %v1068_v14 }
0x181d   :  { %v1070_v16 = vmul.f32 1.442695, %v1069_v15 }
0x181f   :  { %1378 = vpow2.f32 %v1070_v16 }
0x182c   :  { %v1379_v17 = vpop.eup %1378 }
0x182d   :  { %1072 = vadd.xlane.f32.xlu0 %v1379_v17 }
0x1843   :  { %1080 = vperm.xlu0 %1301, %v1078_v18  }
0x18b6   :  { %v1073_v19 = vpop.xlane.xlu0 %1072 }
0x18b7   :  { %1380 = vlog2.f32 %v1073_v19 }
0x18be   :  { %v1081_v21 = vpop.permute.xlu0 %1080 }
0x18bf   :  { %vm1082_vm6 = vcmp.eq.s32.totalorder %v1665_v11, %v1081_v21 }
0x18c0   :  { %v1160_v4 = vsel %vm1082_vm6, 1.0, %v1539_v0 }
0x18c4   :  { %v1381_v20 = vpop.eup %1380 }
0x18c5   :  { %v1075_v22 = vmul.f32 0.6931472, %v1381_v20 }
0x18c7   :  { %v1076_v23 = vadd.f32 %v1075_v22, %v1068_v14 }
0x18c9   :  { %v1077_v24 = vsub.f32 %v1061_v8, %v1076_v23 }
0x18cb   :  { %v1085_v26 = vmul.f32 %v1160_v4, %v1077_v24 }
0x18cd   :  { %1086 = vadd.xlane.f32.xlu1 %v1085_v26 }
0x18ce   :  { %1493 = shalt.err (!%p1490_p1)
}
0x18cf   :  { %1108 = dma.vmem_to_hbm [thread:$0]  %s1106_s1, 128, %s1858_s10, [#allocation7]   ;;  %vm1097_vm7 = vcmask 0  }
0x18d0   :  { %s1545_s14 = smov [#allocation15]  }
0x18d1   :  { %s1115_s15 = sshll.u32 %s1545_s14, 4  ;;  %s1116_s15 = int_to_ptr.vmem [resolvable:$true] %s1115_s15 }
0x18d2   :  { %s1502_s16 = scalar_lea.vmem %s1116_s15, 16  ;;  %s1506_s17 = scalar_lea.vmem %s1116_s15, 32 }
0x18d3   :  { %p1503_p2 = scmp.ne.s32.totalorder %s1116_s15, %s1502_s16  ;;  %p1507_p3 = scmp.lt.s32.totalorder %s1116_s15, %s1116_s15 }
0x18d4   :  { %p1508_p4 = scmp.lt.s32.totalorder %s1506_s17, %s1502_s16 }
0x18d6   :  { %p1509_p5 = por %p1508_p4, %p1507_p3 }
0x18d8   :  { %p1510_p6 = pnand %p1509_p5, %p1503_p2 }
0x1956   :  { %v1087_v11 = vpop.xlane.xlu1 %1086 }
0x1957   :  { %v1088_v27 = vrot.slane %v1087_v11, 4 }
0x1959   :  { %v1089_v0 = vadd.f32 %v1088_v27, %v1087_v11 }
0x195b   :  { %v1090_v6 = vrot.slane %v1089_v0, 2 }
0x195d   :  { %v1091_v28 = vadd.f32 %v1090_v6, %v1089_v0 }
0x195f   :  { %v1092_v29 = vrot.slane %v1091_v28, 1 }
0x1961   :  { %v1093_v30 = vadd.f32 %v1092_v29, %v1091_v28 }
0x1963   :  { %v1095_v31 = vmul.f32 0.125, %v1093_v30 }
0x1965   :  { %v1096_v32 = vsub.f32 0.0, %v1095_v31 }
0x1967   :  { %1098 = vst.msk [vmem:[#allocation15] sm:$0x1] %vm1097_vm7, %v1096_v32 }
0x1968   :  { %1513 = shalt.err (!%p1510_p6)
}
0x1969   :  { %1118 = dma.vmem_to_hbm [thread:$0]  %s1116_s15, 16, %s1859_s11, [#allocation16]  }
0x196a   :  { %1528 = dma.done.wait [#allocation7], 128  }
0x196b   :  { %1529 = vsyncadd [#allocation7], 4294967168 }
0x196c   :  { %1530 = dma.done.wait [#allocation16], 16  }
0x196d   :  { %1531 = vsyncadd [#allocation16], 4294967280 }
0x196e   :  { %1125 = vsyncpa [#allocation6], 1 }
0x196f   :  { %1126 = vsyncpa [#allocation9], 1 }
0x1970   :  { %1127 = vsyncpa [#allocation12], 1 }
0x1971   :  { %1128 = vsyncpa [#allocation7], 1 }
0x1972   :  { %1129 = vsyncpa [#allocation16], 1 }

</bundles_post_ra>
